<compile_context>
chip_gen: v7x
topology: tpu7x:2x2x1
jax: 0.10.0
libtpu: 0.0.40
codegen_flags: <defaults>
</compile_context>

<pallas_src>
import jax
import jax.numpy as jnp
from jax.experimental import pallas as pl
from jax.experimental.pallas import tpu as pltpu


def _round_up(v, m):
    return ((v + m - 1) // m) * m


def attn_pallas(x, params, heads, head_dim, *, q_tile=None, kv_tile=None,
                cache_kv=None):
    """Fused LayerNorm + multi-head self-attention forward (eval mode)."""
    B, S, D = x.shape
    inner = heads * head_dim
    gamma, beta, wq, bq, wkv, bkv, wo, bo = params

    # v6e/v7x MXU is 256 deep -> 256-wide tiles fill it and halve grid steps.
    tq = q_tile if q_tile is not None else min(S, 256)
    tk = kv_tile if kv_tile is not None else min(S, 256)
    assert S % tq == 0 and S % tk == 0
    nq, nk = S // tq, S // tk

    # Per-generation VMEM budget (leave ~25% headroom for compiler scratch).
    try:
        info = pltpu.get_tpu_info()
        vmem_cap = int(getattr(info, "vmem_capacity_bytes", 128 * 1024 * 1024))
    except Exception:  # pragma: no cover - conservative fallback
        vmem_cap = 128 * 1024 * 1024
    vmem_limit = int(vmem_cap * 3 // 4)

    # Size-gate the persistent K/V cache (padded bf16 footprint, K + V), leaving
    # room for the resident weights, double-buffered x tiles and the scores tile.
    kv_cache_bytes = (2 * nk * heads * _round_up(tk, 16)
                      * _round_up(head_dim, 128) * 2)
    weight_bytes = 2 * (D * 3 * inner + inner * D) * 2   # double-buffered bf16
    if cache_kv is None:
        cache_kv = nq > 1 and (kv_cache_bytes + weight_bytes) <= vmem_limit // 2
    cache_blocks = nk if cache_kv else 1

    def kernel(xq_ref, xkv_ref, g_ref, b_ref, wq_ref, bq_ref, wkv_ref, bkv_ref,
               wo_ref, bo_ref, o_ref,
               q_sc, m_sc, l_sc, acc_sc, y_sc, k_cache, v_cache):
        qi = pl.program_id(1)
        ki = pl.program_id(2)

        def layernorm(xx):                      # fp32 in / fp32 out, eps = 1e-5
            mu = jnp.mean(xx, axis=-1, keepdims=True)
            var = jnp.mean((xx - mu) ** 2, axis=-1, keepdims=True)
            return (xx - mu) * jax.lax.rsqrt(var + 1e-5) * g_ref[...] + b_ref[...]

        # ---- first KV step for this (batch, q-tile): project Q, init state ----
        @pl.when(ki == 0)
        def _():
            xq = layernorm(xq_ref[0].astype(jnp.float32))            # (tq, D)
            q2d = (jnp.dot(xq.astype(jnp.bfloat16), wq_ref[...],
                           preferred_element_type=jnp.float32)
                   + bq_ref[...]).astype(jnp.bfloat16)               # (tq, inner)
            for h in range(heads):   # once per q-tile: relayout to head-leading
                q_sc[h] = q2d[:, h * head_dim:(h + 1) * head_dim]
            m_sc[...] = jnp.full(m_sc.shape, -jnp.inf, m_sc.dtype)
            l_sc[...] = jnp.zeros(l_sc.shape, l_sc.dtype)
            acc_sc[...] = jnp.zeros(acc_sc.shape, acc_sc.dtype)

        # ---- K/V projection: one lane-dense matmul, head-leading store ----
        slot = ki if cache_kv else 0

        def project_kv():
            xkv = layernorm(xkv_ref[0].astype(jnp.float32))          # (tk, D)
            kvp = (jnp.dot(xkv.astype(jnp.bfloat16), wkv_ref[...],
                           preferred_element_type=jnp.float32)
                   + bkv_ref[...]).astype(jnp.bfloat16)              # (tk, 2*inner)
            for h in range(heads):
                k_cache[slot, h] = kvp[:, h * head_dim:(h + 1) * head_dim]
                v_cache[slot, h] = kvp[:, inner + h * head_dim:
                                       inner + (h + 1) * head_dim]

        if cache_kv:
            @pl.when(qi == 0)        # fill once per batch, reuse for qi > 0
            def _():
                project_kv()
        else:
            project_kv()

        k3 = k_cache[slot]                                           # (heads, tk, hd)
        v3 = v_cache[slot]
        q3 = q_sc[...]                                               # (heads, tq, hd)

        # ---- online softmax, all heads batched (1/sqrt(hd) folded into Wq) ----
        s = jnp.einsum('hqd,hkd->hqk', q3, k3,
                       preferred_element_type=jnp.float32)           # (heads, tq, tk)
        m_prev = m_sc[...]
        m_new = jnp.maximum(m_prev, jnp.max(s, axis=-1, keepdims=True))
        alpha = jnp.exp(m_prev - m_new)
        p = jnp.exp(s - m_new)
        l_sc[...] = alpha * l_sc[...] + jnp.sum(p, axis=-1, keepdims=True)
        acc_sc[...] = alpha * acc_sc[...] + jnp.einsum(
            'hqk,hkd->hqd', p.astype(jnp.bfloat16), v3,
            preferred_element_type=jnp.float32)
        m_sc[...] = m_new
        # TODO(synk): nn.Dropout(p=0.1) on the attention probs is identity in
        # eval mode; training-mode dropout (pltpu.prng_random_bits mask) not emitted.

        # ---- last KV step: normalize, re-layout to (tq, inner), output proj ----
        @pl.when(ki == nk - 1)
        def _():
            acc_n = acc_sc[...] * pl.reciprocal(l_sc[...], approx=True)
            for h in range(heads):   # once per q-tile: back to lane-contiguous
                y_sc[:, h * head_dim:(h + 1) * head_dim] = acc_n[h].astype(
                    jnp.bfloat16)
            y = jnp.dot(y_sc[...], wo_ref[...],
                        preferred_element_type=jnp.float32) + bo_ref[...]
            o_ref[0] = y.astype(o_ref.dtype)

    def const(shape):                            # grid-invariant operand spec
        return pl.BlockSpec(shape, lambda b, qi, ki: (0,) * len(shape))

    if cache_kv:
        # With the VMEM K/V cache the xkv rows are only *used* at qi == 0; for
        # qi > 0 keep the block index constant so the pipeline elides the DMA.
        xkv_map = lambda b, qi, ki: (b, jnp.where(qi == 0, ki, 0), 0)
        dims = ("parallel", "arbitrary", "arbitrary")   # qi must stay sequential
    else:
        xkv_map = lambda b, qi, ki: (b, ki, 0)
        dims = ("parallel", "parallel", "arbitrary")

    flops = (2 * B * S * D * 3 * inner            # QKV projections
             + 4 * B * heads * S * S * head_dim   # scores + P@V
             + 2 * B * S * inner * D)             # output projection
    transcendentals = 2 * B * heads * S * S       # exp(p) + exp(alpha)
    bytes_accessed = (2 * B * S * D * 4           # x in + out (f32)
                      + (D * 3 * inner + inner * D) * 2    # bf16 weights
                      + (3 * inner + 3 * D) * 4)           # biases / ln params

    return pl.pallas_call(
        kernel,
        out_shape=jax.ShapeDtypeStruct((B, S, D), x.dtype),
        grid_spec=pltpu.PrefetchScalarGridSpec(
            num_scalar_prefetch=0,
            grid=(B, nq, nk),
            in_specs=[
                pl.BlockSpec((1, tq, D), lambda b, qi, ki: (b, qi, 0)),  # x (q rows)
                pl.BlockSpec((1, tk, D), xkv_map),                       # x (kv rows)
                const((1, D)),                                           # ln gamma
                const((1, D)),                                           # ln beta
                const((D, inner)),                                       # Wq  (bf16)
                const((1, inner)),                                       # bq  (f32)
                const((D, 2 * inner)),                                   # Wkv (bf16)
                const((1, 2 * inner)),                                   # bkv (f32)
                const((inner, D)),                                       # Wo  (bf16)
                const((1, D)),                                           # bo  (f32)
            ],
            out_specs=pl.BlockSpec((1, tq, D), lambda b, qi, ki: (b, qi, 0)),
            scratch_shapes=[
                pltpu.VMEM((heads, tq, head_dim), jnp.bfloat16),   # Q (head-leading)
                pltpu.VMEM((heads, tq, 1), jnp.float32),           # running max
                pltpu.VMEM((heads, tq, 1), jnp.float32),           # running denom
                pltpu.VMEM((heads, tq, head_dim), jnp.float32),    # output acc
                pltpu.VMEM((tq, inner), jnp.bfloat16),             # lane-dense slab
                pltpu.VMEM((cache_blocks, heads, tk, head_dim), jnp.bfloat16),  # K
                pltpu.VMEM((cache_blocks, heads, tk, head_dim), jnp.bfloat16),  # V
            ]),
        compiler_params=pltpu.CompilerParams(
            dimension_semantics=dims,
            vmem_limit_bytes=vmem_limit),
        cost_estimate=pl.CostEstimate(
            flops=int(flops), transcendentals=int(transcendentals),
            bytes_accessed=int(bytes_accessed)),
    )(x, x, gamma, beta, wq, bq, wkv, bkv, wo, bo)


def make_params(key, dim, heads, head_dim):
    inner = heads * head_dim
    ks = jax.random.split(key, 6)
    # PyTorch-style shapes: Linear weight is [out_features, in_features].
    w_qkv = jax.random.normal(ks[0], (3 * inner, dim), jnp.float32) * 0.05
    b_qkv = jax.random.normal(ks[1], (3 * inner,), jnp.float32) * 0.02
    w_out = jax.random.normal(ks[2], (dim, inner), jnp.float32) * 0.05
    b_out = jax.random.normal(ks[3], (dim,), jnp.float32) * 0.02
    gamma = 1.0 + 0.1 * jax.random.normal(ks[4], (dim,), jnp.float32)
    beta = 0.1 * jax.random.normal(ks[5], (dim,), jnp.float32)

    # Kernel layouts: xn @ W == Linear(xn).  Wq / Wkv are split so the kernel
    # only computes the columns it needs; 1/sqrt(head_dim) is folded into Q.
    scale = head_dim ** (-0.5)
    w_all = w_qkv.T                                        # (dim, 3*inner)
    wq = (w_all[:, :inner] * scale).astype(jnp.bfloat16)   # (dim, inner)
    wkv = w_all[:, inner:].astype(jnp.bfloat16)            # (dim, 2*inner)
    bq = (b_qkv[:inner] * scale).reshape(1, inner)         # f32
    bkv = b_qkv[inner:].reshape(1, 2 * inner)              # f32
    wo = w_out.T.astype(jnp.bfloat16)                      # (inner, dim)
    bo = b_out.reshape(1, dim)                             # f32

    kernel_params = (gamma.reshape(1, dim), beta.reshape(1, dim),
                     wq, bq, wkv, bkv, wo, bo)
    torch_style = (w_qkv, b_qkv, w_out, b_out, gamma, beta)
    return kernel_params, torch_style


def reference_attn(x, torch_params, heads, head_dim):
    """Plain-JAX fp32 re-implementation of the PyTorch forward (eval mode)."""
    w_qkv, b_qkv, w_out, b_out, gamma, beta = torch_params
    B, S, D = x.shape
    mu = jnp.mean(x, axis=-1, keepdims=True)
    var = jnp.mean((x - mu) ** 2, axis=-1, keepdims=True)
    xn = (x - mu) / jnp.sqrt(var + 1e-5) * gamma + beta
    qkv = xn @ w_qkv.T + b_qkv                           # (B, S, 3*inner)
    q, k, v = jnp.split(qkv, 3, axis=-1)

    def to_heads(t):
        return t.reshape(B, S, heads, head_dim).transpose(0, 2, 1, 3)

    q, k, v = map(to_heads, (q, k, v))
    scores = jnp.einsum('bhqe,bhke->bhqk', q, k) * (head_dim ** -0.5)
    probs = jax.nn.softmax(scores, axis=-1)
    out = jnp.einsum('bhqk,bhke->bhqe', probs, v)
    out = out.transpose(0, 2, 1, 3).reshape(B, S, heads * head_dim)
    return out @ w_out.T + b_out


if __name__ == "__main__":
    B, S, dim = 2, 16, 32
    heads, head_dim = 4, 16

    key = jax.random.PRNGKey(0)
    kx, kp = jax.random.split(key)
    x = jax.random.normal(kx, (B, S, dim), jnp.float32)

    kernel_params, torch_params = make_params(kp, dim, heads, head_dim)

    # Small explicit tiles so the test exercises multi-tile flash accumulation
    # (nk = 2) and persistent K/V cache reuse across q-tiles (nq = 2).
    y = attn_pallas(x, kernel_params, heads, head_dim, q_tile=8, kv_tile=8)
    y = jax.block_until_ready(y)

    y_ref = reference_attn(x, torch_params, heads, head_dim)
    max_err = float(jnp.max(jnp.abs(y - y_ref)))
    # bf16 matmuls + approx reciprocal vs fp32 reference -> loose tolerance.
    assert jnp.allclose(y, y_ref, atol=2e-2, rtol=2e-2), \
        f"mismatch vs reference (max abs err {max_err})"

    print("KERNEL_OK")
</pallas_src>

<mosaic_0001>
module attributes {stable_mosaic.version = 11 : i64} {
  func.func @kernel(%arg0: i32, %arg1: i32, %arg2: i32, %arg3: memref<1x8x32xf32, #tpu.memory_space<vmem>>, %arg4: memref<1x8x32xf32, #tpu.memory_space<vmem>>, %arg5: memref<1x32xf32, #tpu.memory_space<vmem>>, %arg6: memref<1x32xf32, #tpu.memory_space<vmem>>, %arg7: memref<32x64xbf16, #tpu.memory_space<vmem>>, %arg8: memref<1x64xf32, #tpu.memory_space<vmem>>, %arg9: memref<32x128xbf16, #tpu.memory_space<vmem>>, %arg10: memref<1x128xf32, #tpu.memory_space<vmem>>, %arg11: memref<64x32xbf16, #tpu.memory_space<vmem>>, %arg12: memref<1x32xf32, #tpu.memory_space<vmem>>, %arg13: memref<1x8x32xf32, #tpu.memory_space<vmem>>, %arg14: memref<4x8x16xbf16, #tpu.memory_space<vmem>>, %arg15: memref<4x8x1xf32, #tpu.memory_space<vmem>>, %arg16: memref<4x8x1xf32, #tpu.memory_space<vmem>>, %arg17: memref<4x8x16xf32, #tpu.memory_space<vmem>>, %arg18: memref<8x64xbf16, #tpu.memory_space<vmem>>, %arg19: memref<2x4x8x16xbf16, #tpu.memory_space<vmem>>, %arg20: memref<2x4x8x16xbf16, #tpu.memory_space<vmem>>) attributes {dimension_semantics = [#tpu.dimension_semantics<parallel>, #tpu.dimension_semantics<arbitrary>, #tpu.dimension_semantics<arbitrary>], iteration_bounds = array<i64: 2, 2, 2>, scalar_prefetch = 0 : i64, scratch_operands = 7 : i64, tpu.core_type = #tpu.core_type<tc>, window_params = [{transform_indices = @transform_0, window_bounds = array<i64: 1, 8, 32>}, {transform_indices = @transform_1, window_bounds = array<i64: 1, 8, 32>}, {pipeline_mode = #tpu.pipeline_mode<synchronous>, transform_indices = @transform_2, window_bounds = array<i64: 1, 32>}, {pipeline_mode = #tpu.pipeline_mode<synchronous>, transform_indices = @transform_3, window_bounds = array<i64: 1, 32>}, {pipeline_mode = #tpu.pipeline_mode<synchronous>, transform_indices = @transform_4, window_bounds = array<i64: 32, 64>}, {pipeline_mode = #tpu.pipeline_mode<synchronous>, transform_indices = @transform_5, window_bounds = array<i64: 1, 64>}, {pipeline_mode = #tpu.pipeline_mode<synchronous>, transform_indices = @transform_6, window_bounds = array<i64: 32, 128>}, {pipeline_mode = #tpu.pipeline_mode<synchronous>, transform_indices = @transform_7, window_bounds = array<i64: 1, 128>}, {pipeline_mode = #tpu.pipeline_mode<synchronous>, transform_indices = @transform_8, window_bounds = array<i64: 64, 32>}, {pipeline_mode = #tpu.pipeline_mode<synchronous>, transform_indices = @transform_9, window_bounds = array<i64: 1, 32>}, {transform_indices = @transform_10, window_bounds = array<i64: 1, 8, 32>}]} {
    %c0_i32 = arith.constant 0 : i32
    %0 = arith.cmpi eq, %arg2, %c0_i32 : i32
    %1 = arith.extui %0 : i1 to i32
    %c0_i32_0 = arith.constant 0 : i32
    %2 = arith.cmpi ne, %1, %c0_i32_0 : i32
    scf.if %2 {
      %c0_33 = arith.constant 0 : index
      %c0_34 = arith.constant 0 : index
      %c0_35 = arith.constant 0 : index
      %40 = vector.load %arg3[%c0_33, %c0_34, %c0_35] : memref<1x8x32xf32, #tpu.memory_space<vmem>>, vector<1x8x32xf32>
      %41 = vector.shape_cast %40 : vector<1x8x32xf32> to vector<8x32xf32>
      %cst_36 = arith.constant dense<0.000000e+00> : vector<8xf32>
      %42 = vector.multi_reduction <add>, %41, %cst_36 [1] : vector<8x32xf32> to vector<8xf32>
      %43 = vector.shape_cast %42 : vector<8xf32> to vector<8x1xf32>
      %cst_37 = arith.constant 3.200000e+01 : f32
      %44 = vector.broadcast %cst_37 : f32 to vector<8x1xf32>
      %45 = arith.divf %43, %44 : vector<8x1xf32>
      %46 = vector.broadcast %45 : vector<8x1xf32> to vector<8x32xf32>
      %47 = arith.subf %41, %46 : vector<8x32xf32>
      %48 = arith.mulf %47, %47 : vector<8x32xf32>
      %cst_38 = arith.constant dense<0.000000e+00> : vector<8xf32>
      %49 = vector.multi_reduction <add>, %48, %cst_38 [1] : vector<8x32xf32> to vector<8xf32>
      %50 = vector.shape_cast %49 : vector<8xf32> to vector<8x1xf32>
      %cst_39 = arith.constant 3.200000e+01 : f32
      %51 = vector.broadcast %cst_39 : f32 to vector<8x1xf32>
      %52 = arith.divf %50, %51 : vector<8x1xf32>
      %53 = vector.broadcast %45 : vector<8x1xf32> to vector<8x32xf32>
      %54 = arith.subf %41, %53 : vector<8x32xf32>
      %cst_40 = arith.constant 9.99999974E-6 : f32
      %55 = vector.broadcast %cst_40 : f32 to vector<8x1xf32>
      %56 = arith.addf %52, %55 : vector<8x1xf32>
      %57 = math.rsqrt %56 : vector<8x1xf32>
      %58 = vector.broadcast %57 : vector<8x1xf32> to vector<8x32xf32>
      %59 = arith.mulf %54, %58 : vector<8x32xf32>
      %c0_41 = arith.constant 0 : index
      %c0_42 = arith.constant 0 : index
      %60 = vector.load %arg5[%c0_41, %c0_42] : memref<1x32xf32, #tpu.memory_space<vmem>>, vector<1x32xf32>
      %61 = vector.broadcast %60 : vector<1x32xf32> to vector<8x32xf32>
      %62 = arith.mulf %59, %61 : vector<8x32xf32>
      %c0_43 = arith.constant 0 : index
      %c0_44 = arith.constant 0 : index
      %63 = vector.load %arg6[%c0_43, %c0_44] : memref<1x32xf32, #tpu.memory_space<vmem>>, vector<1x32xf32>
      %64 = vector.broadcast %63 : vector<1x32xf32> to vector<8x32xf32>
      %65 = arith.addf %62, %64 : vector<8x32xf32>
      %66 = arith.truncf %65 : vector<8x32xf32> to vector<8x32xbf16>
      %c0_45 = arith.constant 0 : index
      %c0_46 = arith.constant 0 : index
      %67 = vector.load %arg7[%c0_45, %c0_46] : memref<32x64xbf16, #tpu.memory_space<vmem>>, vector<32x64xbf16>
      %cst_47 = arith.constant dense<0.000000e+00> : vector<8x64xf32>
      %68 = tpu.matmul %66, %67, %cst_47 {dimension_numbers = #tpu.dot_dimension_numbers<[1], [0], [0], [1], [0, 0, 1, 1], [], []>} : vector<8x32xbf16>, vector<32x64xbf16>, vector<8x64xf32> -> vector<8x64xf32>
      %c0_48 = arith.constant 0 : index
      %c0_49 = arith.constant 0 : index
      %69 = vector.load %arg8[%c0_48, %c0_49] : memref<1x64xf32, #tpu.memory_space<vmem>>, vector<1x64xf32>
      %70 = vector.broadcast %69 : vector<1x64xf32> to vector<8x64xf32>
      %71 = arith.addf %68, %70 : vector<8x64xf32>
      %72 = arith.truncf %71 : vector<8x64xf32> to vector<8x64xbf16>
      %73 = vector.extract_strided_slice %72 {offsets = [0, 0], sizes = [8, 16], strides = [1, 1]} : vector<8x64xbf16> to vector<8x16xbf16>
      %c0_50 = arith.constant 0 : index
      %c0_51 = arith.constant 0 : index
      %c0_52 = arith.constant 0 : index
      %74 = vector.load %arg14[%c0_50, %c0_51, %c0_52] : memref<4x8x16xbf16, #tpu.memory_space<vmem>>, vector<1x8x16xbf16>
      %75 = vector.shape_cast %74 : vector<1x8x16xbf16> to vector<8x16xbf16>
      %76 = vector.shape_cast %73 : vector<8x16xbf16> to vector<1x8x16xbf16>
      tpu.vector_store %arg14[%c0_50, %c0_51, %c0_52], %76 {strides = array<i32>} : memref<4x8x16xbf16, #tpu.memory_space<vmem>>, vector<1x8x16xbf16>,
      %77 = vector.extract_strided_slice %72 {offsets = [0, 16], sizes = [8, 16], strides = [1, 1]} : vector<8x64xbf16> to vector<8x16xbf16>
      %c1 = arith.constant 1 : index
      %c0_53 = arith.constant 0 : index
      %c0_54 = arith.constant 0 : index
      %78 = vector.load %arg14[%c1, %c0_53, %c0_54] : memref<4x8x16xbf16, #tpu.memory_space<vmem>>, vector<1x8x16xbf16>
      %79 = vector.shape_cast %78 : vector<1x8x16xbf16> to vector<8x16xbf16>
      %80 = vector.shape_cast %77 : vector<8x16xbf16> to vector<1x8x16xbf16>
      tpu.vector_store %arg14[%c1, %c0_53, %c0_54], %80 {strides = array<i32>} : memref<4x8x16xbf16, #tpu.memory_space<vmem>>, vector<1x8x16xbf16>,
      %81 = vector.extract_strided_slice %72 {offsets = [0, 32], sizes = [8, 16], strides = [1, 1]} : vector<8x64xbf16> to vector<8x16xbf16>
      %c2 = arith.constant 2 : index
      %c0_55 = arith.constant 0 : index
      %c0_56 = arith.constant 0 : index
      %82 = vector.load %arg14[%c2, %c0_55, %c0_56] : memref<4x8x16xbf16, #tpu.memory_space<vmem>>, vector<1x8x16xbf16>
      %83 = vector.shape_cast %82 : vector<1x8x16xbf16> to vector<8x16xbf16>
      %84 = vector.shape_cast %81 : vector<8x16xbf16> to vector<1x8x16xbf16>
      tpu.vector_store %arg14[%c2, %c0_55, %c0_56], %84 {strides = array<i32>} : memref<4x8x16xbf16, #tpu.memory_space<vmem>>, vector<1x8x16xbf16>,
      %85 = vector.extract_strided_slice %72 {offsets = [0, 48], sizes = [8, 16], strides = [1, 1]} : vector<8x64xbf16> to vector<8x16xbf16>
      %c3 = arith.constant 3 : index
      %c0_57 = arith.constant 0 : index
      %c0_58 = arith.constant 0 : index
      %86 = vector.load %arg14[%c3, %c0_57, %c0_58] : memref<4x8x16xbf16, #tpu.memory_space<vmem>>, vector<1x8x16xbf16>
      %87 = vector.shape_cast %86 : vector<1x8x16xbf16> to vector<8x16xbf16>
      %88 = vector.shape_cast %85 : vector<8x16xbf16> to vector<1x8x16xbf16>
      tpu.vector_store %arg14[%c3, %c0_57, %c0_58], %88 {strides = array<i32>} : memref<4x8x16xbf16, #tpu.memory_space<vmem>>, vector<1x8x16xbf16>,
      %cst_59 = arith.constant 0xFF800000 : f32
      %89 = vector.broadcast %cst_59 : f32 to vector<4x8x1xf32>
      %c0_60 = arith.constant 0 : index
      %c0_61 = arith.constant 0 : index
      %c0_62 = arith.constant 0 : index
      %90 = vector.load %arg15[%c0_60, %c0_61, %c0_62] : memref<4x8x1xf32, #tpu.memory_space<vmem>>, vector<4x8x1xf32>
      tpu.vector_store %arg15[%c0_60, %c0_61, %c0_62], %89 {strides = array<i32>} : memref<4x8x1xf32, #tpu.memory_space<vmem>>, vector<4x8x1xf32>,
      %cst_63 = arith.constant 0.000000e+00 : f32
      %91 = vector.broadcast %cst_63 : f32 to vector<4x8x1xf32>
      %c0_64 = arith.constant 0 : index
      %c0_65 = arith.constant 0 : index
      %c0_66 = arith.constant 0 : index
      %92 = vector.load %arg16[%c0_64, %c0_65, %c0_66] : memref<4x8x1xf32, #tpu.memory_space<vmem>>, vector<4x8x1xf32>
      tpu.vector_store %arg16[%c0_64, %c0_65, %c0_66], %91 {strides = array<i32>} : memref<4x8x1xf32, #tpu.memory_space<vmem>>, vector<4x8x1xf32>,
      %cst_67 = arith.constant 0.000000e+00 : f32
      %93 = vector.broadcast %cst_67 : f32 to vector<4x8x16xf32>
      %c0_68 = arith.constant 0 : index
      %c0_69 = arith.constant 0 : index
      %c0_70 = arith.constant 0 : index
      %94 = vector.load %arg17[%c0_68, %c0_69, %c0_70] : memref<4x8x16xf32, #tpu.memory_space<vmem>>, vector<4x8x16xf32>
      tpu.vector_store %arg17[%c0_68, %c0_69, %c0_70], %93 {strides = array<i32>} : memref<4x8x16xf32, #tpu.memory_space<vmem>>, vector<4x8x16xf32>,
    } else {
    }
    %c0_i32_1 = arith.constant 0 : i32
    %3 = arith.cmpi eq, %arg1, %c0_i32_1 : i32
    %4 = arith.extui %3 : i1 to i32
    %c0_i32_2 = arith.constant 0 : i32
    %5 = arith.cmpi ne, %4, %c0_i32_2 : i32
    scf.if %5 {
      %c0_33 = arith.constant 0 : index
      %c0_34 = arith.constant 0 : index
      %c0_35 = arith.constant 0 : index
      %40 = vector.load %arg4[%c0_33, %c0_34, %c0_35] : memref<1x8x32xf32, #tpu.memory_space<vmem>>, vector<1x8x32xf32>
      %41 = vector.shape_cast %40 : vector<1x8x32xf32> to vector<8x32xf32>
      %cst_36 = arith.constant dense<0.000000e+00> : vector<8xf32>
      %42 = vector.multi_reduction <add>, %41, %cst_36 [1] : vector<8x32xf32> to vector<8xf32>
      %43 = vector.shape_cast %42 : vector<8xf32> to vector<8x1xf32>
      %cst_37 = arith.constant 3.200000e+01 : f32
      %44 = vector.broadcast %cst_37 : f32 to vector<8x1xf32>
      %45 = arith.divf %43, %44 : vector<8x1xf32>
      %46 = vector.broadcast %45 : vector<8x1xf32> to vector<8x32xf32>
      %47 = arith.subf %41, %46 : vector<8x32xf32>
      %48 = arith.mulf %47, %47 : vector<8x32xf32>
      %cst_38 = arith.constant dense<0.000000e+00> : vector<8xf32>
      %49 = vector.multi_reduction <add>, %48, %cst_38 [1] : vector<8x32xf32> to vector<8xf32>
      %50 = vector.shape_cast %49 : vector<8xf32> to vector<8x1xf32>
      %cst_39 = arith.constant 3.200000e+01 : f32
      %51 = vector.broadcast %cst_39 : f32 to vector<8x1xf32>
      %52 = arith.divf %50, %51 : vector<8x1xf32>
      %53 = vector.broadcast %45 : vector<8x1xf32> to vector<8x32xf32>
      %54 = arith.subf %41, %53 : vector<8x32xf32>
      %cst_40 = arith.constant 9.99999974E-6 : f32
      %55 = vector.broadcast %cst_40 : f32 to vector<8x1xf32>
      %56 = arith.addf %52, %55 : vector<8x1xf32>
      %57 = math.rsqrt %56 : vector<8x1xf32>
      %58 = vector.broadcast %57 : vector<8x1xf32> to vector<8x32xf32>
      %59 = arith.mulf %54, %58 : vector<8x32xf32>
      %c0_41 = arith.constant 0 : index
      %c0_42 = arith.constant 0 : index
      %60 = vector.load %arg5[%c0_41, %c0_42] : memref<1x32xf32, #tpu.memory_space<vmem>>, vector<1x32xf32>
      %61 = vector.broadcast %60 : vector<1x32xf32> to vector<8x32xf32>
      %62 = arith.mulf %59, %61 : vector<8x32xf32>
      %c0_43 = arith.constant 0 : index
      %c0_44 = arith.constant 0 : index
      %63 = vector.load %arg6[%c0_43, %c0_44] : memref<1x32xf32, #tpu.memory_space<vmem>>, vector<1x32xf32>
      %64 = vector.broadcast %63 : vector<1x32xf32> to vector<8x32xf32>
      %65 = arith.addf %62, %64 : vector<8x32xf32>
      %66 = arith.truncf %65 : vector<8x32xf32> to vector<8x32xbf16>
      %c0_45 = arith.constant 0 : index
      %c0_46 = arith.constant 0 : index
      %67 = vector.load %arg9[%c0_45, %c0_46] : memref<32x128xbf16, #tpu.memory_space<vmem>>, vector<32x128xbf16>
      %cst_47 = arith.constant dense<0.000000e+00> : vector<8x128xf32>
      %68 = tpu.matmul %66, %67, %cst_47 {dimension_numbers = #tpu.dot_dimension_numbers<[1], [0], [0], [1], [0, 0, 1, 1], [], []>} : vector<8x32xbf16>, vector<32x128xbf16>, vector<8x128xf32> -> vector<8x128xf32>
      %c0_48 = arith.constant 0 : index
      %c0_49 = arith.constant 0 : index
      %69 = vector.load %arg10[%c0_48, %c0_49] : memref<1x128xf32, #tpu.memory_space<vmem>>, vector<1x128xf32>
      %70 = vector.broadcast %69 : vector<1x128xf32> to vector<8x128xf32>
      %71 = arith.addf %68, %70 : vector<8x128xf32>
      %72 = arith.truncf %71 : vector<8x128xf32> to vector<8x128xbf16>
      %73 = vector.extract_strided_slice %72 {offsets = [0, 0], sizes = [8, 16], strides = [1, 1]} : vector<8x128xbf16> to vector<8x16xbf16>
      %74 = arith.index_cast %arg2 : i32 to index
      %c0_50 = arith.constant 0 : index
      %c0_51 = arith.constant 0 : index
      %c0_52 = arith.constant 0 : index
      %75 = vector.load %arg19[%74, %c0_50, %c0_51, %c0_52] : memref<2x4x8x16xbf16, #tpu.memory_space<vmem>>, vector<1x1x8x16xbf16>
      %76 = vector.shape_cast %75 : vector<1x1x8x16xbf16> to vector<8x16xbf16>
      %77 = vector.shape_cast %73 : vector<8x16xbf16> to vector<1x1x8x16xbf16>
      tpu.vector_store %arg19[%74, %c0_50, %c0_51, %c0_52], %77 {strides = array<i32>} : memref<2x4x8x16xbf16, #tpu.memory_space<vmem>>, vector<1x1x8x16xbf16>,
      %78 = vector.extract_strided_slice %72 {offsets = [0, 64], sizes = [8, 16], strides = [1, 1]} : vector<8x128xbf16> to vector<8x16xbf16>
      %79 = arith.index_cast %arg2 : i32 to index
      %c0_53 = arith.constant 0 : index
      %c0_54 = arith.constant 0 : index
      %c0_55 = arith.constant 0 : index
      %80 = vector.load %arg20[%79, %c0_53, %c0_54, %c0_55] : memref<2x4x8x16xbf16, #tpu.memory_space<vmem>>, vector<1x1x8x16xbf16>
      %81 = vector.shape_cast %80 : vector<1x1x8x16xbf16> to vector<8x16xbf16>
      %82 = vector.shape_cast %78 : vector<8x16xbf16> to vector<1x1x8x16xbf16>
      tpu.vector_store %arg20[%79, %c0_53, %c0_54, %c0_55], %82 {strides = array<i32>} : memref<2x4x8x16xbf16, #tpu.memory_space<vmem>>, vector<1x1x8x16xbf16>,
      %83 = vector.extract_strided_slice %72 {offsets = [0, 16], sizes = [8, 16], strides = [1, 1]} : vector<8x128xbf16> to vector<8x16xbf16>
      %84 = arith.index_cast %arg2 : i32 to index
      %c1 = arith.constant 1 : index
      %c0_56 = arith.constant 0 : index
      %c0_57 = arith.constant 0 : index
      %85 = vector.load %arg19[%84, %c1, %c0_56, %c0_57] : memref<2x4x8x16xbf16, #tpu.memory_space<vmem>>, vector<1x1x8x16xbf16>
      %86 = vector.shape_cast %85 : vector<1x1x8x16xbf16> to vector<8x16xbf16>
      %87 = vector.shape_cast %83 : vector<8x16xbf16> to vector<1x1x8x16xbf16>
      tpu.vector_store %arg19[%84, %c1, %c0_56, %c0_57], %87 {strides = array<i32>} : memref<2x4x8x16xbf16, #tpu.memory_space<vmem>>, vector<1x1x8x16xbf16>,
      %88 = vector.extract_strided_slice %72 {offsets = [0, 80], sizes = [8, 16], strides = [1, 1]} : vector<8x128xbf16> to vector<8x16xbf16>
      %89 = arith.index_cast %arg2 : i32 to index
      %c1_58 = arith.constant 1 : index
      %c0_59 = arith.constant 0 : index
      %c0_60 = arith.constant 0 : index
      %90 = vector.load %arg20[%89, %c1_58, %c0_59, %c0_60] : memref<2x4x8x16xbf16, #tpu.memory_space<vmem>>, vector<1x1x8x16xbf16>
      %91 = vector.shape_cast %90 : vector<1x1x8x16xbf16> to vector<8x16xbf16>
      %92 = vector.shape_cast %88 : vector<8x16xbf16> to vector<1x1x8x16xbf16>
      tpu.vector_store %arg20[%89, %c1_58, %c0_59, %c0_60], %92 {strides = array<i32>} : memref<2x4x8x16xbf16, #tpu.memory_space<vmem>>, vector<1x1x8x16xbf16>,
      %93 = vector.extract_strided_slice %72 {offsets = [0, 32], sizes = [8, 16], strides = [1, 1]} : vector<8x128xbf16> to vector<8x16xbf16>
      %94 = arith.index_cast %arg2 : i32 to index
      %c2 = arith.constant 2 : index
      %c0_61 = arith.constant 0 : index
      %c0_62 = arith.constant 0 : index
      %95 = vector.load %arg19[%94, %c2, %c0_61, %c0_62] : memref<2x4x8x16xbf16, #tpu.memory_space<vmem>>, vector<1x1x8x16xbf16>
      %96 = vector.shape_cast %95 : vector<1x1x8x16xbf16> to vector<8x16xbf16>
      %97 = vector.shape_cast %93 : vector<8x16xbf16> to vector<1x1x8x16xbf16>
      tpu.vector_store %arg19[%94, %c2, %c0_61, %c0_62], %97 {strides = array<i32>} : memref<2x4x8x16xbf16, #tpu.memory_space<vmem>>, vector<1x1x8x16xbf16>,
      %98 = vector.extract_strided_slice %72 {offsets = [0, 96], sizes = [8, 16], strides = [1, 1]} : vector<8x128xbf16> to vector<8x16xbf16>
      %99 = arith.index_cast %arg2 : i32 to index
      %c2_63 = arith.constant 2 : index
      %c0_64 = arith.constant 0 : index
      %c0_65 = arith.constant 0 : index
      %100 = vector.load %arg20[%99, %c2_63, %c0_64, %c0_65] : memref<2x4x8x16xbf16, #tpu.memory_space<vmem>>, vector<1x1x8x16xbf16>
      %101 = vector.shape_cast %100 : vector<1x1x8x16xbf16> to vector<8x16xbf16>
      %102 = vector.shape_cast %98 : vector<8x16xbf16> to vector<1x1x8x16xbf16>
      tpu.vector_store %arg20[%99, %c2_63, %c0_64, %c0_65], %102 {strides = array<i32>} : memref<2x4x8x16xbf16, #tpu.memory_space<vmem>>, vector<1x1x8x16xbf16>,
      %103 = vector.extract_strided_slice %72 {offsets = [0, 48], sizes = [8, 16], strides = [1, 1]} : vector<8x128xbf16> to vector<8x16xbf16>
      %104 = arith.index_cast %arg2 : i32 to index
      %c3 = arith.constant 3 : index
      %c0_66 = arith.constant 0 : index
      %c0_67 = arith.constant 0 : index
      %105 = vector.load %arg19[%104, %c3, %c0_66, %c0_67] : memref<2x4x8x16xbf16, #tpu.memory_space<vmem>>, vector<1x1x8x16xbf16>
      %106 = vector.shape_cast %105 : vector<1x1x8x16xbf16> to vector<8x16xbf16>
      %107 = vector.shape_cast %103 : vector<8x16xbf16> to vector<1x1x8x16xbf16>
      tpu.vector_store %arg19[%104, %c3, %c0_66, %c0_67], %107 {strides = array<i32>} : memref<2x4x8x16xbf16, #tpu.memory_space<vmem>>, vector<1x1x8x16xbf16>,
      %108 = vector.extract_strided_slice %72 {offsets = [0, 112], sizes = [8, 16], strides = [1, 1]} : vector<8x128xbf16> to vector<8x16xbf16>
      %109 = arith.index_cast %arg2 : i32 to index
      %c3_68 = arith.constant 3 : index
      %c0_69 = arith.constant 0 : index
      %c0_70 = arith.constant 0 : index
      %110 = vector.load %arg20[%109, %c3_68, %c0_69, %c0_70] : memref<2x4x8x16xbf16, #tpu.memory_space<vmem>>, vector<1x1x8x16xbf16>
      %111 = vector.shape_cast %110 : vector<1x1x8x16xbf16> to vector<8x16xbf16>
      %112 = vector.shape_cast %108 : vector<8x16xbf16> to vector<1x1x8x16xbf16>
      tpu.vector_store %arg20[%109, %c3_68, %c0_69, %c0_70], %112 {strides = array<i32>} : memref<2x4x8x16xbf16, #tpu.memory_space<vmem>>, vector<1x1x8x16xbf16>,
    } else {
    }
    %6 = arith.index_cast %arg2 : i32 to index
    %c0 = arith.constant 0 : index
    %c0_3 = arith.constant 0 : index
    %c0_4 = arith.constant 0 : index
    %7 = vector.load %arg19[%6, %c0, %c0_3, %c0_4] : memref<2x4x8x16xbf16, #tpu.memory_space<vmem>>, vector<1x4x8x16xbf16>
    %8 = vector.shape_cast %7 : vector<1x4x8x16xbf16> to vector<4x8x16xbf16>
    %9 = arith.index_cast %arg2 : i32 to index
    %c0_5 = arith.constant 0 : index
    %c0_6 = arith.constant 0 : index
    %c0_7 = arith.constant 0 : index
    %10 = vector.load %arg20[%9, %c0_5, %c0_6, %c0_7] : memref<2x4x8x16xbf16, #tpu.memory_space<vmem>>, vector<1x4x8x16xbf16>
    %11 = vector.shape_cast %10 : vector<1x4x8x16xbf16> to vector<4x8x16xbf16>
    %c0_8 = arith.constant 0 : index
    %c0_9 = arith.constant 0 : index
    %c0_10 = arith.constant 0 : index
    %12 = vector.load %arg14[%c0_8, %c0_9, %c0_10] : memref<4x8x16xbf16, #tpu.memory_space<vmem>>, vector<4x8x16xbf16>
    "tpu.trace_start"() <{level = 10 : i32, message = "hqd,hkd->hqk"}> : () -> ()
    %cst = arith.constant dense<0.000000e+00> : vector<4x8x8xf32>
    %13 = tpu.matmul %12, %8, %cst {dimension_numbers = #tpu.dot_dimension_numbers<[2], [2], [1], [1], [0, 0, 0, 1, 1, 1], [0], [0]>} : vector<4x8x16xbf16>, vector<4x8x16xbf16>, vector<4x8x8xf32> -> vector<4x8x8xf32>
    "tpu.trace_stop"() : () -> ()
    %c0_11 = arith.constant 0 : index
    %c0_12 = arith.constant 0 : index
    %c0_13 = arith.constant 0 : index
    %14 = vector.load %arg15[%c0_11, %c0_12, %c0_13] : memref<4x8x1xf32, #tpu.memory_space<vmem>>, vector<4x8x1xf32>
    %cst_14 = arith.constant dense<0xFF800000> : vector<4x8xf32>
    %15 = vector.multi_reduction <maximumf>, %13, %cst_14 [2] : vector<4x8x8xf32> to vector<4x8xf32>
    %16 = vector.shape_cast %15 : vector<4x8xf32> to vector<4x8x1xf32>
    %17 = arith.maximumf %14, %16 : vector<4x8x1xf32>
    %18 = arith.subf %14, %17 : vector<4x8x1xf32>
    %19 = math.exp %18 : vector<4x8x1xf32>
    %20 = vector.broadcast %17 : vector<4x8x1xf32> to vector<4x8x8xf32>
    %21 = arith.subf %13, %20 : vector<4x8x8xf32>
    %22 = math.exp %21 : vector<4x8x8xf32>
    %c0_15 = arith.constant 0 : index
    %c0_16 = arith.constant 0 : index
    %c0_17 = arith.constant 0 : index
    %23 = vector.load %arg16[%c0_15, %c0_16, %c0_17] : memref<4x8x1xf32, #tpu.memory_space<vmem>>, vector<4x8x1xf32>
    %24 = arith.mulf %19, %23 : vector<4x8x1xf32>
    %cst_18 = arith.constant dense<0.000000e+00> : vector<4x8xf32>
    %25 = vector.multi_reduction <add>, %22, %cst_18 [2] : vector<4x8x8xf32> to vector<4x8xf32>
    %26 = vector.shape_cast %25 : vector<4x8xf32> to vector<4x8x1xf32>
    %27 = arith.addf %24, %26 : vector<4x8x1xf32>
    %c0_19 = arith.constant 0 : index
    %c0_20 = arith.constant 0 : index
    %c0_21 = arith.constant 0 : index
    %28 = vector.load %arg16[%c0_19, %c0_20, %c0_21] : memref<4x8x1xf32, #tpu.memory_space<vmem>>, vector<4x8x1xf32>
    tpu.vector_store %arg16[%c0_19, %c0_20, %c0_21], %27 {strides = array<i32>} : memref<4x8x1xf32, #tpu.memory_space<vmem>>, vector<4x8x1xf32>,
    %c0_22 = arith.constant 0 : index
    %c0_23 = arith.constant 0 : index
    %c0_24 = arith.constant 0 : index
    %29 = vector.load %arg17[%c0_22, %c0_23, %c0_24] : memref<4x8x16xf32, #tpu.memory_space<vmem>>, vector<4x8x16xf32>
    %30 = vector.broadcast %19 : vector<4x8x1xf32> to vector<4x8x16xf32>
    %31 = arith.mulf %30, %29 : vector<4x8x16xf32>
    %32 = arith.truncf %22 : vector<4x8x8xf32> to vector<4x8x8xbf16>
    "tpu.trace_start"() <{level = 10 : i32, message = "hqk,hkd->hqd"}> : () -> ()
    %cst_25 = arith.constant dense<0.000000e+00> : vector<4x8x16xf32>
    %33 = tpu.matmul %32, %11, %cst_25 {dimension_numbers = #tpu.dot_dimension_numbers<[2], [1], [1], [2], [0, 0, 0, 1, 1, 2], [0], [0]>} : vector<4x8x8xbf16>, vector<4x8x16xbf16>, vector<4x8x16xf32> -> vector<4x8x16xf32>
    "tpu.trace_stop"() : () -> ()
    %34 = arith.addf %31, %33 : vector<4x8x16xf32>
    %c0_26 = arith.constant 0 : index
    %c0_27 = arith.constant 0 : index
    %c0_28 = arith.constant 0 : index
    %35 = vector.load %arg17[%c0_26, %c0_27, %c0_28] : memref<4x8x16xf32, #tpu.memory_space<vmem>>, vector<4x8x16xf32>
    tpu.vector_store %arg17[%c0_26, %c0_27, %c0_28], %34 {strides = array<i32>} : memref<4x8x16xf32, #tpu.memory_space<vmem>>, vector<4x8x16xf32>,
    %c0_29 = arith.constant 0 : index
    %c0_30 = arith.constant 0 : index
    %c0_31 = arith.constant 0 : index
    %36 = vector.load %arg15[%c0_29, %c0_30, %c0_31] : memref<4x8x1xf32, #tpu.memory_space<vmem>>, vector<4x8x1xf32>
    tpu.vector_store %arg15[%c0_29, %c0_30, %c0_31], %17 {strides = array<i32>} : memref<4x8x1xf32, #tpu.memory_space<vmem>>, vector<4x8x1xf32>,
    %c1_i32 = arith.constant 1 : i32
    %37 = arith.cmpi eq, %arg2, %c1_i32 : i32
    %38 = arith.extui %37 : i1 to i32
    %c0_i32_32 = arith.constant 0 : i32
    %39 = arith.cmpi ne, %38, %c0_i32_32 : i32
    scf.if %39 {
      %c0_33 = arith.constant 0 : index
      %c0_34 = arith.constant 0 : index
      %c0_35 = arith.constant 0 : index
      %40 = vector.load %arg17[%c0_33, %c0_34, %c0_35] : memref<4x8x16xf32, #tpu.memory_space<vmem>>, vector<4x8x16xf32>
      %c0_36 = arith.constant 0 : index
      %c0_37 = arith.constant 0 : index
      %c0_38 = arith.constant 0 : index
      %41 = vector.load %arg16[%c0_36, %c0_37, %c0_38] : memref<4x8x1xf32, #tpu.memory_space<vmem>>, vector<4x8x1xf32>
      %42 = tpu.reciprocal %41 {approx = true} : vector<4x8x1xf32> -> vector<4x8x1xf32>
      %43 = vector.broadcast %42 : vector<4x8x1xf32> to vector<4x8x16xf32>
      %44 = arith.mulf %40, %43 : vector<4x8x16xf32>
      %45 = vector.extract_strided_slice %44 {offsets = [0, 0, 0], sizes = [1, 8, 16], strides = [1, 1, 1]} : vector<4x8x16xf32> to vector<1x8x16xf32>
      %46 = vector.shape_cast %45 : vector<1x8x16xf32> to vector<8x16xf32>
      %47 = arith.truncf %46 : vector<8x16xf32> to vector<8x16xbf16>
      %c0_39 = arith.constant 0 : index
      %c0_40 = arith.constant 0 : index
      %48 = vector.load %arg18[%c0_39, %c0_40] : memref<8x64xbf16, #tpu.memory_space<vmem>>, vector<8x16xbf16>
      tpu.vector_store %arg18[%c0_39, %c0_40], %47 {strides = array<i32>} : memref<8x64xbf16, #tpu.memory_space<vmem>>, vector<8x16xbf16>,
      %49 = vector.extract_strided_slice %44 {offsets = [1, 0, 0], sizes = [1, 8, 16], strides = [1, 1, 1]} : vector<4x8x16xf32> to vector<1x8x16xf32>
      %50 = vector.shape_cast %49 : vector<1x8x16xf32> to vector<8x16xf32>
      %51 = arith.truncf %50 : vector<8x16xf32> to vector<8x16xbf16>
      %c0_41 = arith.constant 0 : index
      %c16 = arith.constant 16 : index
      %52 = vector.load %arg18[%c0_41, %c16] : memref<8x64xbf16, #tpu.memory_space<vmem>>, vector<8x16xbf16>
      tpu.vector_store %arg18[%c0_41, %c16], %51 {strides = array<i32>} : memref<8x64xbf16, #tpu.memory_space<vmem>>, vector<8x16xbf16>,
      %53 = vector.extract_strided_slice %44 {offsets = [2, 0, 0], sizes = [1, 8, 16], strides = [1, 1, 1]} : vector<4x8x16xf32> to vector<1x8x16xf32>
      %54 = vector.shape_cast %53 : vector<1x8x16xf32> to vector<8x16xf32>
      %55 = arith.truncf %54 : vector<8x16xf32> to vector<8x16xbf16>
      %c0_42 = arith.constant 0 : index
      %c32 = arith.constant 32 : index
      %56 = vector.load %arg18[%c0_42, %c32] : memref<8x64xbf16, #tpu.memory_space<vmem>>, vector<8x16xbf16>
      tpu.vector_store %arg18[%c0_42, %c32], %55 {strides = array<i32>} : memref<8x64xbf16, #tpu.memory_space<vmem>>, vector<8x16xbf16>,
      %57 = vector.extract_strided_slice %44 {offsets = [3, 0, 0], sizes = [1, 8, 16], strides = [1, 1, 1]} : vector<4x8x16xf32> to vector<1x8x16xf32>
      %58 = vector.shape_cast %57 : vector<1x8x16xf32> to vector<8x16xf32>
      %59 = arith.truncf %58 : vector<8x16xf32> to vector<8x16xbf16>
      %c0_43 = arith.constant 0 : index
      %c48 = arith.constant 48 : index
      %60 = vector.load %arg18[%c0_43, %c48] : memref<8x64xbf16, #tpu.memory_space<vmem>>, vector<8x16xbf16>
      tpu.vector_store %arg18[%c0_43, %c48], %59 {strides = array<i32>} : memref<8x64xbf16, #tpu.memory_space<vmem>>, vector<8x16xbf16>,
      %c0_44 = arith.constant 0 : index
      %c0_45 = arith.constant 0 : index
      %61 = vector.load %arg18[%c0_44, %c0_45] : memref<8x64xbf16, #tpu.memory_space<vmem>>, vector<8x64xbf16>
      %c0_46 = arith.constant 0 : index
      %c0_47 = arith.constant 0 : index
      %62 = vector.load %arg11[%c0_46, %c0_47] : memref<64x32xbf16, #tpu.memory_space<vmem>>, vector<64x32xbf16>
      %cst_48 = arith.constant dense<0.000000e+00> : vector<8x32xf32>
      %63 = tpu.matmul %61, %62, %cst_48 {dimension_numbers = #tpu.dot_dimension_numbers<[1], [0], [0], [1], [0, 0, 1, 1], [], []>} : vector<8x64xbf16>, vector<64x32xbf16>, vector<8x32xf32> -> vector<8x32xf32>
      %c0_49 = arith.constant 0 : index
      %c0_50 = arith.constant 0 : index
      %64 = vector.load %arg12[%c0_49, %c0_50] : memref<1x32xf32, #tpu.memory_space<vmem>>, vector<1x32xf32>
      %65 = vector.broadcast %64 : vector<1x32xf32> to vector<8x32xf32>
      %66 = arith.addf %63, %65 : vector<8x32xf32>
      %c0_51 = arith.constant 0 : index
      %c0_52 = arith.constant 0 : index
      %c0_53 = arith.constant 0 : index
      %67 = vector.load %arg13[%c0_51, %c0_52, %c0_53] : memref<1x8x32xf32, #tpu.memory_space<vmem>>, vector<1x8x32xf32>
      %68 = vector.shape_cast %67 : vector<1x8x32xf32> to vector<8x32xf32>
      %69 = vector.shape_cast %66 : vector<8x32xf32> to vector<1x8x32xf32>
      tpu.vector_store %arg13[%c0_51, %c0_52, %c0_53], %69 {strides = array<i32>} : memref<1x8x32xf32, #tpu.memory_space<vmem>>, vector<1x8x32xf32>,
    } else {
    }
    return
  }
  func.func @transform_0(%arg0: i32, %arg1: i32, %arg2: i32) -> (i32, i32, i32) {
    %c0_i32 = arith.constant 0 : i32
    %c0_i32_0 = arith.constant 0 : i32
    return %arg0, %arg1, %c0_i32 : i32, i32, i32
  }
  func.func @transform_1(%arg0: i32, %arg1: i32, %arg2: i32) -> (i32, i32, i32) {
    %c0_i32 = arith.constant 0 : i32
    %0 = arith.cmpi eq, %arg1, %c0_i32 : i32
    %c0_i32_0 = arith.constant 0 : i32
    %1 = arith.select %0, %arg2, %c0_i32_0 : i32
    %c0_i32_1 = arith.constant 0 : i32
    %c0_i32_2 = arith.constant 0 : i32
    return %arg0, %1, %c0_i32_1 : i32, i32, i32
  }
  func.func @transform_2(%arg0: i32, %arg1: i32, %arg2: i32) -> (i32, i32) {
    %c0_i32 = arith.constant 0 : i32
    %c0_i32_0 = arith.constant 0 : i32
    %c0_i32_1 = arith.constant 0 : i32
    return %c0_i32, %c0_i32_0 : i32, i32
  }
  func.func @transform_3(%arg0: i32, %arg1: i32, %arg2: i32) -> (i32, i32) {
    %c0_i32 = arith.constant 0 : i32
    %c0_i32_0 = arith.constant 0 : i32
    %c0_i32_1 = arith.constant 0 : i32
    return %c0_i32, %c0_i32_0 : i32, i32
  }
  func.func @transform_4(%arg0: i32, %arg1: i32, %arg2: i32) -> (i32, i32) {
    %c0_i32 = arith.constant 0 : i32
    %c0_i32_0 = arith.constant 0 : i32
    %c0_i32_1 = arith.constant 0 : i32
    return %c0_i32, %c0_i32_0 : i32, i32
  }
  func.func @transform_5(%arg0: i32, %arg1: i32, %arg2: i32) -> (i32, i32) {
    %c0_i32 = arith.constant 0 : i32
    %c0_i32_0 = arith.constant 0 : i32
    %c0_i32_1 = arith.constant 0 : i32
    return %c0_i32, %c0_i32_0 : i32, i32
  }
  func.func @transform_6(%arg0: i32, %arg1: i32, %arg2: i32) -> (i32, i32) {
    %c0_i32 = arith.constant 0 : i32
    %c0_i32_0 = arith.constant 0 : i32
    %c0_i32_1 = arith.constant 0 : i32
    return %c0_i32, %c0_i32_0 : i32, i32
  }
  func.func @transform_7(%arg0: i32, %arg1: i32, %arg2: i32) -> (i32, i32) {
    %c0_i32 = arith.constant 0 : i32
    %c0_i32_0 = arith.constant 0 : i32
    %c0_i32_1 = arith.constant 0 : i32
    return %c0_i32, %c0_i32_0 : i32, i32
  }
  func.func @transform_8(%arg0: i32, %arg1: i32, %arg2: i32) -> (i32, i32) {
    %c0_i32 = arith.constant 0 : i32
    %c0_i32_0 = arith.constant 0 : i32
    %c0_i32_1 = arith.constant 0 : i32
    return %c0_i32, %c0_i32_0 : i32, i32
  }
  func.func @transform_9(%arg0: i32, %arg1: i32, %arg2: i32) -> (i32, i32) {
    %c0_i32 = arith.constant 0 : i32
    %c0_i32_0 = arith.constant 0 : i32
    %c0_i32_1 = arith.constant 0 : i32
    return %c0_i32, %c0_i32_0 : i32, i32
  }
  func.func @transform_10(%arg0: i32, %arg1: i32, %arg2: i32) -> (i32, i32, i32) {
    %c0_i32 = arith.constant 0 : i32
    %c0_i32_0 = arith.constant 0 : i32
    return %arg0, %arg1, %c0_i32 : i32, i32, i32
  }
}

</mosaic_0001>

<bundles_post_ra>
// kernel: tpu_custom_call.1
= control target key start
LH: loop header
LB: loop body
LE: loop exit
PB: predicated region body
PF: predicated region fallthrough
CT: control target
= control target key end

     0   :  { %s3469_s0 = inlined_call_operand.hbm [shape: f32[2,16,32], index: 0, kind: input, shape index: {}]   ;;  %s3470_s1 = inlined_call_operand.hbm [shape: f32[2,16,32], index: 1, kind: input, shape index: {}]   ;;  %s3471_s2 = inlined_call_operand.hbm [shape: f32[1,32], index: 2, kind: input, shape index: {}]   ;;  %s3472_s3 = inlined_call_operand.hbm [shape: f32[1,32], index: 3, kind: input, shape index: {}]   ;;  %s3473_s4 = inlined_call_operand.hbm [shape: bf16[32,64], index: 4, kind: input, shape index: {}]   ;;  %s3474_s5 = inlined_call_operand.hbm [shape: f32[1,64], index: 5, kind: input, shape index: {}]   ;;  %s3475_s6 = inlined_call_operand.hbm [shape: bf16[32,128], index: 6, kind: input, shape index: {}]   ;;  %s3476_s7 = inlined_call_operand.hbm [shape: f32[1,128], index: 7, kind: input, shape index: {}]   ;;  %s3477_s8 = inlined_call_operand.hbm [shape: bf16[64,32], index: 8, kind: input, shape index: {}]   ;;  %s3478_s9 = inlined_call_operand.hbm [shape: f32[1,32], index: 9, kind: input, shape index: {}]   ;;  %s3479_s10 = inlined_call_operand.hbm [shape: f32[2,16,32], index: 10, kind: output, shape index: {}]  }
   0x1   :  { %3493 = sst [smem:[#allocation43_spill]] %s3469_s0 }
   0x2   :  { %3494 = sst [smem:[#allocation44_spill]] %s3470_s1 }
   0x3   :  { %3495 = sst [smem:[#allocation45_spill]] %s3471_s2 }
   0x4   :  { %3496 = sst [smem:[#allocation46_spill]] %s3472_s3 }
   0x5   :  { %3497 = sst [smem:[#allocation47_spill]] %s3473_s4 }
   0x6   :  { %3498 = sst [smem:[#allocation48_spill]] %s3474_s5 }
   0x7   :  { %3499 = sst [smem:[#allocation49_spill]] %s3475_s6 }
   0x8   :  { %3500 = sst [smem:[#allocation50_spill]] %s3476_s7 }
   0x9   :  { %3501 = sst [smem:[#allocation51_spill]] %s3477_s8 }
   0xa   :  { %3502 = sst [smem:[#allocation52_spill]] %s3478_s9 }
   0xb   :  { %3503 = sst [smem:[#allocation53_spill]] %s3479_s10 }
   0xc   :  { %15 = vsyncpa [#allocation10], 0 }
   0xd   :  { %17 = vsyncpa [#allocation10 + $0x1], 0 }
   0xe   :  { %18 = vsyncpa [#allocation13], 0 }
   0xf   :  { %20 = vsyncpa [#allocation13 + $0x1], 0 }
  0x10   :  { %21 = vsyncpa [#allocation16], 0 }
  0x11   :  { %22 = vsyncpa [#allocation19], 0 }
  0x12   :  { %23 = vsyncpa [#allocation22], 0 }
  0x13   :  { %24 = vsyncpa [#allocation25], 0 }
  0x14   :  { %25 = vsyncpa [#allocation11], 0 }
  0x15   :  { %27 = vsyncpa [#allocation11 + $0x1], 0  ;;  %s2793_s13 = smov 0   ;;  %s2795_s14 = smov 0  }
  0x16   :  { %s2797_s15 = smov 0   ;;  %s2799_s16 = smov 0  }
  0x17   :  { %s2801_s17 = smov 0   ;;  %s2803_s18 = smov 0  }
  0x18   :  { %s2805_s19 = smov 0   ;;  %s2807_s20 = smov 0  }
  0x19   :  { %s2809_s21 = smov 0   ;;  %s2811_s22 = smov 0  }
  0x1a   :  { %s2813_s23 = smov 0   ;;  %s2815_s24 = smov 0  }
  0x1b   :  { %s2817_s25 = smov 0  }
  0x1c LB: > { %3504 = sst [smem:[#allocation35_spill]] %s2651_s13  ;;  %s2859_s26 = sadd.s32 4294967295, %s2699_s25   ;;  %s2699_s25 = sphi %s2817_s25, %s33_s25   ;;  %s2695_s24 = sphi %s2815_s24, %s3577_s24   ;;  %s2691_s23 = sphi %s2813_s23, %s3576_s23   ;;  %s2687_s22 = sphi %s2811_s22, %s3575_s22   ;;  %s2683_s21 = sphi %s2809_s21, %s3574_s21   ;;  %s2679_s20 = sphi %s2807_s20, %s3573_s20   ;;  %s2675_s19 = sphi %s2805_s19, %s3572_s19   ;;  %s2671_s18 = sphi %s2803_s18, %s3571_s18   ;;  %s2667_s17 = sphi %s2801_s17, %s3570_s17   ;;  %s2663_s16 = sphi %s2799_s16, %s3569_s16   ;;  %s2659_s15 = sphi %s2797_s15, %s3568_s15   ;;  %s2655_s14 = sphi %s2795_s14, %s3565_s14   ;;  %s2651_s13 = sphi %s2793_s13, %s3564_s13  }
  0x1d   : > { %3505 = sst [smem:[#allocation36_spill]] %s2655_s14  ;;  %p1774_p0 = scmp.ge.s32.totalorder %s2699_s25, 1 }
  0x1e   : > { %3506 = sst [smem:[#allocation37_spill]] %s2659_s15  ;;  %p3484_p1 = scmp.eq.s32.totalorder %s2859_s26, 0 }
  0x1f   : > { %3507 = sst [smem:[#allocation38_spill]] %s2675_s19  ;;  %p313_p2 = scmp.lt.s32.totalorder %s2699_s25, 9 }
  0x20   : > { %3508 = sst [smem:[#allocation39_spill]] %s2679_s20  ;;  %s2701_s28 = smov [#allocation14]  }
  0x21   : > { %3509 = sst [smem:[#allocation40_spill]] %s2683_s21  ;;  %p2864_p3 = pnand %p1774_p0, %p313_p2 }
  0x22   : > { %s326_s29 = sshll.u32 %s2701_s28, 4  ;;  %s2702_s30 = smov [#allocation15]   ;;  %s327_s29 = int_to_ptr.vmem [resolvable:$true] %s326_s29 }
  0x23   : > { %s3510_s27 = scalar_select %p2864_p3, 1, 0 }
  0x24   : > { %p2021_p4 = pneg %p2864_p3  ;;  %s337_s11 = sshll.u32 %s2702_s30, 4  ;;  %s2876_s11 = int_to_ptr.vmem [resolvable:$true] %s337_s11 }
  0x25   : > { %3511 = sst [smem:[#allocation41_spill]] %s3510_s27  ;;  %s2703_s10 = smov [#allocation18]  }
  0x26   : > { %p2872_p5 = pnand %p2021_p4, %p3484_p1  ;;  %s361_s21 = sshll.u32 %s2703_s10, 4  ;;  %s2878_s21 = int_to_ptr.vmem [resolvable:$true] %s361_s21 }
  0x27   : > { %s3513_s2 = sld [smem:[#allocation45_spill]] }
  0x28   : > { %p2888_p7 = pneg %p2872_p5 }
  0x2d   : > { %s2253_s28 = scalar_lea.hbm %s3513_s2, 16 }
  0x2e   : > { %p2254_p6 = scmp.ne.s32.totalorder %s3513_s2, %s2253_s28  ;;  %p2260_p10 = scmp.lt.u32.totalorder %s2253_s28, %s3513_s2 }
  0x30   : > { %p2256_p8 = pnand %p2888_p7, %p2254_p6 }
  0x32   : > { %p2257_p9 = pneg %p2256_p8 }
  0x34   : > { %p2262_p11 = pnand %p2260_p10, %p2257_p9 }
  0x36   : > { %2265 = shalt.err (!%p2262_p11)
}
  0x37   : > { %s2266_s19 = scalar_lea.vmem %s327_s29, 16  ;;  %s2273_s1 = scalar_lea.vmem %s327_s29, 32 }
  0x38   : > { %p2267_p12 = scmp.ne.s32.totalorder %s327_s29, %s2266_s19  ;;  %p2274_p2 = scmp.lt.s32.totalorder %s327_s29, %s327_s29 }
  0x39   : > { %p2275_p4 = scmp.lt.s32.totalorder %s2273_s1, %s2266_s19 }
  0x3a   : > { %p2269_p13 = pnand %p2267_p12, %p2888_p7 }
  0x3b   : > { %p2276_p1 = por %p2275_p4, %p2274_p2 }
  0x3c   : > { %p2270_p0 = pneg %p2269_p13 }
  0x3e   : > { %p2277_p3 = pnand %p2276_p1, %p2270_p0 }
  0x40   : > { %2280 = shalt.err (!%p2277_p3)
}
  0x41   : > { %2024 = dma.hbm_to_vmem [thread:$0]  (!%p2872_p5), %s3513_s2, 16, %s327_s29, [#allocation13]  }
  0x42   : > { %s3515_s3 = sld [smem:[#allocation46_spill]] }
  0x48   : > { %s2281_s10 = scalar_lea.hbm %s3515_s3, 16 }
  0x49   : > { %p2282_p6 = scmp.ne.s32.totalorder %s3515_s3, %s2281_s10  ;;  %p2288_p1 = scmp.lt.u32.totalorder %s2281_s10, %s3515_s3 }
  0x4b   : > { %p2284_p8 = pnand %p2282_p6, %p2888_p7 }
  0x4d   : > { %p2285_p9 = pneg %p2284_p8 }
  0x4f   : > { %p2290_p3 = pnand %p2288_p1, %p2285_p9 }
  0x51   : > { %2293 = shalt.err (!%p2290_p3)
}
  0x52   : > { %s2294_s29 = scalar_lea.vmem %s2876_s11, 16  ;;  %s2301_s14 = scalar_lea.vmem %s2876_s11, 32 }
  0x53   : > { %p2295_p10 = scmp.ne.s32.totalorder %s2876_s11, %s2294_s29  ;;  %p2302_p13 = scmp.lt.s32.totalorder %s2876_s11, %s2876_s11 }
  0x54   : > { %p2303_p0 = scmp.lt.s32.totalorder %s2301_s14, %s2294_s29 }
  0x55   : > { %p2297_p11 = pnand %p2295_p10, %p2888_p7 }
  0x56   : > { %p2304_p2 = por %p2303_p0, %p2302_p13 }
  0x57   : > { %p2298_p12 = pneg %p2297_p11 }
  0x59   : > { %p2305_p4 = pnand %p2304_p2, %p2298_p12 }
  0x5b   : > { %2308 = shalt.err (!%p2305_p4)
}
  0x5c   : > { %2027 = dma.hbm_to_vmem [thread:$0]  (!%p2872_p5), %s3515_s3, 16, %s2876_s11, [#allocation16]  }
  0x5d   : > { %s3516_s5 = sld [smem:[#allocation48_spill]] }
  0x63   : > { %s2309_s28 = scalar_lea.hbm %s3516_s5, 16 }
  0x64   : > { %p2310_p6 = scmp.ne.s32.totalorder %s3516_s5, %s2309_s28  ;;  %p2316_p1 = scmp.lt.u32.totalorder %s2309_s28, %s3516_s5 }
  0x66   : > { %p2312_p8 = pnand %p2310_p6, %p2888_p7 }
  0x68   : > { %p2313_p9 = pneg %p2312_p8 }
  0x6a   : > { %p2318_p3 = pnand %p2316_p1, %p2313_p9 }
  0x6c   : > { %2321 = shalt.err (!%p2318_p3)
}
  0x6d   : > { %s2322_s11 = scalar_lea.vmem %s2878_s21, 16  ;;  %s2329_s14 = scalar_lea.vmem %s2878_s21, 32 }
  0x6e   : > { %p2323_p10 = scmp.ne.s32.totalorder %s2878_s21, %s2322_s11  ;;  %p2330_p13 = scmp.lt.s32.totalorder %s2878_s21, %s2878_s21 }
  0x6f   : > { %p2331_p0 = scmp.lt.s32.totalorder %s2329_s14, %s2322_s11 }
  0x70   : > { %p2325_p11 = pnand %p2323_p10, %p2888_p7 }
  0x71   : > { %p2332_p2 = por %p2331_p0, %p2330_p13 }
  0x72   : > { %p2326_p12 = pneg %p2325_p11 }
  0x74   : > { %p2333_p4 = pnand %p2332_p2, %p2326_p12 }
  0x76   : > { %2336 = shalt.err (!%p2333_p4)
}
  0x77   : > { %2033 = dma.hbm_to_vmem [thread:$0]  (!%p2872_p5), %s3516_s5, 16, %s2878_s21, [#allocation19]  }
  0x78   : > { %s2704_s27 = smov [#allocation21]   ;;  %s2705_s28 = smov [#allocation17]  }
  0x79   : > { %s385_s13 = sshll.u32 %s2704_s27, 4  ;;  %s347_s10 = sshll.u32 %s2705_s28, 4  ;;  %s386_s13 = int_to_ptr.vmem [resolvable:$true] %s385_s13  ;;  %s348_s10 = int_to_ptr.vmem [resolvable:$true] %s347_s10 }
  0x7a   : > { %s3517_s7 = sld [smem:[#allocation50_spill]] }
  0x80   : > { %s2337_s29 = scalar_lea.hbm %s3517_s7, 16 }
  0x81   : > { %p2338_p6 = scmp.ne.s32.totalorder %s3517_s7, %s2337_s29  ;;  %p2344_p1 = scmp.lt.u32.totalorder %s2337_s29, %s3517_s7 }
  0x83   : > { %p2340_p8 = pnand %p2338_p6, %p2888_p7 }
  0x85   : > { %p2341_p9 = pneg %p2340_p8 }
  0x87   : > { %p2346_p3 = pnand %p2344_p1, %p2341_p9 }
  0x89   : > { %2349 = shalt.err (!%p2346_p3)
}
  0x8a   : > { %s2350_s21 = scalar_lea.vmem %s386_s13, 16  ;;  %s2357_s20 = scalar_lea.vmem %s386_s13, 32 }
  0x8b   : > { %p2351_p10 = scmp.ne.s32.totalorder %s386_s13, %s2350_s21  ;;  %p2358_p13 = scmp.lt.s32.totalorder %s386_s13, %s386_s13 }
  0x8c   : > { %p2359_p0 = scmp.lt.s32.totalorder %s2357_s20, %s2350_s21 }
  0x8d   : > { %p2353_p11 = pnand %p2351_p10, %p2888_p7 }
  0x8e   : > { %p2360_p2 = por %p2359_p0, %p2358_p13 }
  0x8f   : > { %p2354_p12 = pneg %p2353_p11 }
  0x91   : > { %p2361_p4 = pnand %p2360_p2, %p2354_p12 }
  0x93   : > { %2364 = shalt.err (!%p2361_p4)
}
  0x94   : > { %2039 = dma.hbm_to_vmem [thread:$0]  (!%p2872_p5), %s3517_s7, 16, %s386_s13, [#allocation22]  }
  0x95   : > { %s3518_s4 = sld [smem:[#allocation47_spill]] }
  0x9b   : > { %s2365_s1 = scalar_lea.hbm %s3518_s4, 256 }
  0x9c   : > { %p2366_p6 = scmp.ne.s32.totalorder %s3518_s4, %s2365_s1  ;;  %p2372_p1 = scmp.lt.u32.totalorder %s2365_s1, %s3518_s4 }
  0x9e   : > { %p2368_p8 = pnand %p2366_p6, %p2888_p7 }
  0xa0   : > { %p2369_p9 = pneg %p2368_p8 }
  0xa2   : > { %p2374_p3 = pnand %p2372_p1, %p2369_p9 }
  0xa4   : > { %2377 = shalt.err (!%p2374_p3)
}
  0xa5   : > { %s2378_s21 = scalar_lea.vmem %s348_s10, 256  ;;  %p2386_p13 = scmp.lt.s32.totalorder %s348_s10, %s348_s10 }
  0xa6   : > { %p2379_p10 = scmp.ne.s32.totalorder %s348_s10, %s2378_s21  ;;  %p2387_p0 = scmp.lt.s32.totalorder %s2378_s21, %s2378_s21 }
  0xa8   : > { %p2381_p11 = pnand %p2379_p10, %p2888_p7  ;;  %p2388_p2 = por %p2387_p0, %p2386_p13 }
  0xaa   : > { %p2382_p12 = pneg %p2381_p11 }
  0xac   : > { %p2389_p4 = pnand %p2388_p2, %p2382_p12 }
  0xae   : > { %2392 = shalt.err (!%p2389_p4)
}
  0xaf   : > { %s2706_s13 = smov 64   ;;  %s2707_s20 = smov 4  }
  0xb0   : > { %2030 = dma.hbm_to_vmem [thread:$0]  (!%p2872_p5), %s3518_s4, 256, %s348_s10, [#allocation16], %s2706_s13, %s2706_s13, %s2707_s20  }
  0xb1   : > { %s2708_s2 = smov [#allocation20]   ;;  %s2709_s1 = smov [#allocation23]  }
  0xb2   : > { %s371_s19 = sshll.u32 %s2708_s2, 4  ;;  %s395_s29 = sshll.u32 %s2709_s1, 4  ;;  %s372_s19 = int_to_ptr.vmem [resolvable:$true] %s371_s19  ;;  %s396_s29 = int_to_ptr.vmem [resolvable:$true] %s395_s29 }
  0xb3   : > { %s3519_s6 = sld [smem:[#allocation49_spill]] }
  0xb9   : > { %s2393_s15 = scalar_lea.hbm %s3519_s6, 256 }
  0xba   : > { %p2394_p6 = scmp.ne.s32.totalorder %s3519_s6, %s2393_s15  ;;  %p2400_p1 = scmp.lt.u32.totalorder %s2393_s15, %s3519_s6 }
  0xbc   : > { %p2396_p8 = pnand %p2394_p6, %p2888_p7 }
  0xbe   : > { %p2397_p9 = pneg %p2396_p8 }
  0xc0   : > { %p2402_p3 = pnand %p2400_p1, %p2397_p9 }
  0xc2   : > { %2405 = shalt.err (!%p2402_p3)
}
  0xc3   : > { %s2406_s10 = scalar_lea.vmem %s372_s19, 256  ;;  %p2414_p13 = scmp.lt.s32.totalorder %s372_s19, %s372_s19 }
  0xc4   : > { %p2407_p10 = scmp.ne.s32.totalorder %s372_s19, %s2406_s10  ;;  %p2415_p0 = scmp.lt.s32.totalorder %s2406_s10, %s2406_s10 }
  0xc6   : > { %p2409_p11 = pnand %p2407_p10, %p2888_p7  ;;  %p2416_p2 = por %p2415_p0, %p2414_p13 }
  0xc8   : > { %p2410_p12 = pneg %p2409_p11 }
  0xca   : > { %p2417_p4 = pnand %p2416_p2, %p2410_p12 }
  0xcc   : > { %2420 = shalt.err (!%p2417_p4)
}
  0xcd   : > { %2036 = dma.hbm_to_vmem [thread:$0]  (!%p2872_p5), %s3519_s6, 256, %s372_s19, [#allocation19], %s2706_s13, %s2706_s13, %s2707_s20  }
  0xce   : > { %s3520_s8 = sld [smem:[#allocation51_spill]] }
  0xd4   : > { %s2421_s28 = scalar_lea.hbm %s3520_s8, 512 }
  0xd5   : > { %p2422_p6 = scmp.ne.s32.totalorder %s3520_s8, %s2421_s28  ;;  %p2428_p1 = scmp.lt.u32.totalorder %s2421_s28, %s3520_s8 }
  0xd7   : > { %p2424_p8 = pnand %p2422_p6, %p2888_p7 }
  0xd9   : > { %p2425_p9 = pneg %p2424_p8 }
  0xdb   : > { %p2430_p3 = pnand %p2428_p1, %p2425_p9 }
  0xdd   : > { %2433 = shalt.err (!%p2430_p3)
}
  0xde   : > { %s2434_s15 = scalar_lea.vmem %s396_s29, 512  ;;  %p2442_p13 = scmp.lt.s32.totalorder %s396_s29, %s396_s29 }
  0xdf   : > { %p2435_p10 = scmp.ne.s32.totalorder %s396_s29, %s2434_s15  ;;  %p2443_p0 = scmp.lt.s32.totalorder %s2434_s15, %s2434_s15 }
  0xe1   : > { %p2437_p11 = pnand %p2435_p10, %p2888_p7  ;;  %p2444_p2 = por %p2443_p0, %p2442_p13 }
  0xe3   : > { %p2438_p12 = pneg %p2437_p11 }
  0xe5   : > { %p2445_p4 = pnand %p2444_p2, %p2438_p12 }
  0xe7   : > { %2448 = shalt.err (!%p2445_p4)
}
  0xe8   : > { %2042 = dma.hbm_to_vmem [thread:$0]  (!%p2872_p5), %s3520_s8, 512, %s396_s29, [#allocation22], %s2706_s13, %s2706_s13, %s2707_s20  }
  0xe9   : > { %s2710_s10 = smov [#allocation24]   ;;  %s3521_s9 = sld [smem:[#allocation52_spill]] }
  0xea   : > { %s409_s3 = sshll.u32 %s2710_s10, 4  ;;  %s410_s3 = int_to_ptr.vmem [resolvable:$true] %s409_s3 }
  0xef   : > { %s2449_s27 = scalar_lea.hbm %s3521_s9, 16 }
  0xf0   : > { %p2450_p6 = scmp.ne.s32.totalorder %s3521_s9, %s2449_s27  ;;  %p2456_p1 = scmp.lt.u32.totalorder %s2449_s27, %s3521_s9 }
  0xf2   : > { %p2452_p8 = pnand %p2450_p6, %p2888_p7 }
  0xf4   : > { %p2453_p9 = pneg %p2452_p8 }
  0xf6   : > { %p2458_p3 = pnand %p2456_p1, %p2453_p9 }
  0xf8   : > { %2461 = shalt.err (!%p2458_p3)
}
  0xf9   : > { %s2462_s13 = scalar_lea.vmem %s410_s3, 16  ;;  %s2469_s20 = scalar_lea.vmem %s410_s3, 32 }
  0xfa   : > { %p2463_p10 = scmp.ne.s32.totalorder %s410_s3, %s2462_s13  ;;  %p2470_p13 = scmp.lt.s32.totalorder %s410_s3, %s410_s3 }
  0xfb   : > { %p2471_p0 = scmp.lt.s32.totalorder %s2469_s20, %s2462_s13 }
  0xfc   : > { %p2465_p11 = pnand %p2463_p10, %p2888_p7 }
  0xfd   : > { %p2472_p2 = por %p2471_p0, %p2470_p13 }
  0xfe   : > { %p2466_p12 = pneg %p2465_p11 }
 0x100   : > { %p2473_p4 = pnand %p2472_p2, %p2466_p12 }
 0x102   : > { %2476 = shalt.err (!%p2473_p4)
}
 0x103   : > { %2045 = dma.hbm_to_vmem [thread:$0]  (!%p2872_p5), %s3521_s9, 16, %s410_s3, [#allocation25]  }
 0x104   : > { %s1773_s12 = sadd.s32 4294967294, %s2699_s25   ;;  %s45_s30 = sadd.s32 1, %s2687_s22 }
 0x105   : > { %p46_p7 = scmp.ge.s32.totalorder %s45_s30, 2  ;;  %s48_s15 = sadd.s32 1, %s2691_s23 }
 0x106   : > { %s52_s19 = sadd.s32 1, %s2695_s24  ;;  %s61_s21 = sadd.s32 1, %s2671_s18 }
 0x107   : > { %s3579_s30 = smov (%p46_p7, %s45_s30), 0  ;;  %s3581_s15 = smov (!%p46_p7, %s48_s15), %s2691_s23 }
 0x108   : > { %p68_p6 = scmp.ne.s32.totalorder %s2671_s18, %s2667_s17  ;;  %p3489_p5 = scmp.eq.s32.totalorder %s2699_s25, 0 }
 0x109   : > { %p50_p8 = scmp.ge.s32.totalorder %s3581_s15, 2  ;;  %p74_p9 = scmp.ne.s32.totalorder %s2667_s17, %s2663_s16 }
 0x10a   : > { %p3069_p1 = por %p3489_p5, %p68_p6  ;;  %p84_p3 = scmp.eq.s32.totalorder %s2691_s23, 0 }
 0x10b   : > { %s3583_s15 = smov (%p50_p8, %s3581_s15), 0  ;;  %s3585_s19 = smov (!%p50_p8, %s52_s19), %s2695_s24 }
 0x10c   : > { %s57_s3 = ssub.s32 %s2691_s23, %s3583_s15  ;;  %p3523_p10 = scmp.eq.s32.totalorder %s2859_s26, 0 }
 0x10d   : > { %p54_p12 = scmp.ge.s32.totalorder %s3585_s19, 2  ;;  %p86_p13 = scmp.eq.s32.totalorder %s3583_s15, 0 }
 0x10e   : > { %p3084_p11 = por %p3523_p10, %p74_p9  ;;  %p300_p0 = scmp.eq.s32.totalorder %s2859_s26, 7 }
 0x10f   : > { %s85_s7 = scalar_select %p84_p3, %s2687_s22, 0 }
 0x110   : > { %s3587_s19 = smov (%p54_p12, %s3585_s19), 0  ;;  %p3102_p7 = por %p300_p0, %p68_p6 }
 0x111   : > { %3525 = sst [smem:[#allocation42_spill]] %s3587_s19  ;;  %s56_s28 = ssub.s32 %s2695_s24, %s3587_s19 }
 0x112   : > { %s87_s27 = scalar_select %p86_p13, %s3579_s30, 0 }
 0x113   : > { %s58_s2 = sor.u32 %s57_s3, %s56_s28  ;;  %p306_p8 = scmp.eq.s32.totalorder %s1773_s12, 7 }
 0x114   : > { %s89_s1 = ssub.s32 %s85_s7, %s87_s27  ;;  %p59_p2 = scmp.eq.s32.totalorder %s58_s2, 0 }
 0x115   : > { %s3096_s11 = sor.u32 %s89_s1, %s56_s28  ;;  %p3488_p3 = scmp.lt.s32.totalorder %s2699_s25, 8 }
 0x116   : > { %s3526_s13 = scalar_select %p3102_p7, 1, 0 }
 0x117   : > { %s3107_s20 = scalar_select %p59_p2, %s2671_s18, %s61_s21  }
 0x118   : > { %s420_s29 = sand.u32 1, %s2671_s18   ;;  %s1785_s14 = sshll.u32 %s2695_s24, 1 }
 0x119   : > { %p3117_p10 = por %p306_p8, %p74_p9  ;;  %s1784_s27 = sshll.u32 %s420_s29, 3 }
 0x11a   : > { %s429_s28 = sadd.s32 %s2691_s23, %s1785_s14  ;;  %s3528_s0 = sld [smem:[#allocation43_spill]] }
 0x11b   : > { %s3527_s3 = scalar_select %p3117_p10, 1, 0 }
 0x11c   : > { %s1786_s2 = sshll.u32 %s429_s28, 7  ;;  %s424_s12 = scalar_lea.vmem [#allocation9], %s1784_s27 }
 0x11d   : > { %s433_s21 = sshll.u32 %s424_s12, 4  ;;  %p3133_p6 = pnand %p3488_p3, %p3069_p1  ;;  %s3127_s21 = int_to_ptr.vmem [resolvable:$true] %s433_s21 }
 0x11e   : > { %s3137_s28 = sadd.s32 %s1785_s14, %s85_s7  ;;  %s421_s4 = scalar_lea.sflag [#allocation10], %s420_s29 }
 0x11f   : > { %p2479_p12 = pneg %p3133_p6 }
 0x120   : > { %s3125_s6 = scalar_lea.hbm %s3528_s0, %s1786_s2  ;;  %s2482_s1 = scalar_lea.hbm %s3528_s0, 512 }
 0x121   : > { %s2477_s2 = scalar_lea.hbm %s3125_s6, 128  ;;  %p2483_p1 = scmp.lt.u32.totalorder %s3125_s6, %s3528_s0 }
 0x122   : > { %p2478_p9 = scmp.ne.s32.totalorder %s3125_s6, %s2477_s2  ;;  %p2484_p2 = scmp.lt.u32.totalorder %s2482_s1, %s2477_s2 }
 0x123   : > { %p2486_p3 = scmp.lt.u32.totalorder %s2477_s2, %s3125_s6 }
 0x124   : > { %p2480_p13 = pnand %p2479_p12, %p2478_p9  ;;  %p2485_p8 = por %p2484_p2, %p2483_p1 }
 0x126   : > { %p2481_p0 = pneg %p2480_p13  ;;  %p2487_p5 = por %p2486_p3, %p2485_p8 }
 0x128   : > { %p2488_p4 = pnand %p2487_p5, %p2481_p0 }
 0x12a   : > { %2491 = shalt.err (!%p2488_p4)
}
 0x12b   : > { %s2492_s7 = scalar_lea.vmem %s3127_s21, 128  ;;  %s2711_s29 = smov [#allocation9]  }
 0x12c   : > { %p2493_p9 = scmp.ne.s32.totalorder %s3127_s21, %s2492_s7  ;;  %s2497_s14 = sshll.u32 %s2711_s29, 4  ;;  %s2498_s14 = int_to_ptr.vmem [resolvable:$false] %s2497_s14 }
 0x12d   : > { %s2499_s9 = scalar_lea.vmem %s2498_s14, 256  ;;  %p2500_p7 = scmp.lt.s32.totalorder %s3127_s21, %s2498_s14 }
 0x12e   : > { %p2495_p13 = pnand %p2493_p9, %p2479_p12  ;;  %p2501_p1 = scmp.lt.s32.totalorder %s2499_s9, %s2492_s7 }
 0x130   : > { %p2496_p10 = pneg %p2495_p13  ;;  %p2502_p2 = por %p2501_p1, %p2500_p7 }
 0x132   : > { %p2503_p3 = pnand %p2502_p2, %p2496_p10 }
 0x134   : > { %2506 = shalt.err (!%p2503_p3)
}
 0x135   : > { %s3530_s2 = sld [smem:[#allocation37_spill]]  ;;  %s3531_s27 = sld [smem:[#allocation36_spill]] }
 0x136   : > { %s3532_s10 = sld [smem:[#allocation35_spill]]  ;;  %p3533_p4 = scmp.eq.s32.totalorder %s3096_s11, 0 }
 0x137   : > { %2049 = dma.hbm_to_vmem [thread:$0]  (!%p3133_p6), %s3125_s6, 128, %s3127_s21, %s421_s4  }
 0x138   : > { %p3534_p7 = scmp.eq.s32.totalorder %s2699_s25, 0  ;;  %s440_s12 = sand.u32 1, %s2699_s25  }
 0x139   : > { %p3535_p0 = scmp.eq.s32.totalorder %s2859_s26, 0  ;;  %s1789_s9 = sshll.u32 %s3137_s28, 7 }
 0x13a   : > { %s3537_s6 = sld [smem:[#allocation44_spill]]  ;;  %p3538_p6 = scmp.lt.s32.totalorder %s2699_s25, 8 }
 0x13b   : > { %s93_s1 = sadd.s32 1, %s3530_s2  ;;  %p100_p5 = scmp.ne.s32.totalorder %s3530_s2, %s3531_s27 }
 0x13c   : > { %s3170_s8 = scalar_select %p3533_p4, %s3530_s2, %s93_s1  }
 0x13d   : > { %p102_p10 = por %p100_p5, %p3534_p7  ;;  %p106_p12 = scmp.ne.s32.totalorder %s3531_s27, %s3532_s10 }
 0x13e   : > { %s442_s7 = sand.u32 1, %s3530_s2   ;;  %s441_s28 = scalar_lea.sflag [#allocation13], %s440_s12 }
 0x13f   : > { %p3180_p8 = por %p106_p12, %p3535_p0  ;;  %s1787_s14 = sshll.u32 %s442_s7, 3 }
 0x140   : > { %s3188_s21 = scalar_lea.hbm %s3537_s6, %s1789_s9  ;;  %s444_s11 = scalar_lea.vmem [#allocation12], %s1787_s14 }
 0x141   : > { %s3536_s29 = scalar_select %p3180_p8, 1, 0 }
 0x142   : > { %s455_s4 = sshll.u32 %s444_s11, 4  ;;  %p3192_p9 = pnand %p3538_p6, %p102_p10  ;;  %s3196_s4 = int_to_ptr.vmem [resolvable:$true] %s455_s4 }
 0x143   : > { %s2507_s27 = scalar_lea.hbm %s3188_s21, 128  ;;  %s2512_s10 = scalar_lea.hbm %s3537_s6, 512 }
 0x144   : > { %p2508_p13 = scmp.ne.s32.totalorder %s3188_s21, %s2507_s27  ;;  %p2509_p1 = pneg %p3192_p9 }
 0x145   : > { %p2513_p5 = scmp.lt.u32.totalorder %s3188_s21, %s3537_s6  ;;  %p2514_p4 = scmp.lt.u32.totalorder %s2512_s10, %s2507_s27 }
 0x146   : > { %p2510_p2 = pnand %p2509_p1, %p2508_p13  ;;  %p2516_p10 = scmp.lt.u32.totalorder %s2507_s27, %s3188_s21 }
 0x147   : > { %p2515_p7 = por %p2514_p4, %p2513_p5 }
 0x148   : > { %p2511_p3 = pneg %p2510_p2 }
 0x149   : > { %p2517_p12 = por %p2516_p10, %p2515_p7 }
 0x14b   : > { %p2518_p0 = pnand %p2517_p12, %p2511_p3 }
 0x14d   : > { %2521 = shalt.err (!%p2518_p0)
}
 0x14e   : > { %s2522_s12 = scalar_lea.vmem %s3196_s4, 128  ;;  %s2712_s14 = smov [#allocation12]  }
 0x14f   : > { %p2523_p6 = scmp.ne.s32.totalorder %s3196_s4, %s2522_s12  ;;  %s2527_s9 = sshll.u32 %s2712_s14, 4  ;;  %s2528_s9 = int_to_ptr.vmem [resolvable:$false] %s2527_s9 }
 0x150   : > { %s2529_s11 = scalar_lea.vmem %s2528_s9, 256  ;;  %p2530_p8 = scmp.lt.s32.totalorder %s3196_s4, %s2528_s9 }
 0x151   : > { %p2525_p13 = pnand %p2523_p6, %p2509_p1  ;;  %p2531_p5 = scmp.lt.s32.totalorder %s2529_s11, %s2522_s12 }
 0x153   : > { %p2526_p2 = pneg %p2525_p13  ;;  %p2532_p4 = por %p2531_p5, %p2530_p8 }
 0x155   : > { %p2533_p7 = pnand %p2532_p4, %p2526_p2 }
 0x157   : > { %2536 = shalt.err (!%p2533_p7)
}
 0x158   : > { %2052 = dma.hbm_to_vmem [thread:$0]  (!%p3192_p9), %s3188_s21, 128, %s3196_s4, %s441_s28  }
 0x159   : > { %s3540_s27 = sld [smem:[#allocation41_spill]] }
 0x15f   : > { %p3541_p3 = scmp.ne.s32.totalorder %s3540_s27, 0 }
 0x160   : > { %s3226_s0 = sand.u32 (!%p3541_p3), 1, %s2667_s17  }
 0x161   : > { %464 = sbr.rel (%p3541_p3) target bundleno = 2959 (0xb8f), region = 60  ;;  %s1791_s19 = sshll.u32 (!%p3541_p3), %s3226_s0, 3 }
 0x162   : > { %s467_s10 = scalar_lea.sflag (!%p3541_p3), [#allocation10], %s3226_s0  ;;  %s470_s1 = scalar_lea.vmem (!%p3541_p3), [#allocation9], %s1791_s19 }
 0x168   : > { %2618 = dma.done.wait (%p3084_p11), %s467_s10, 128  }
 0x169   : > { %2620 = vsyncadd (%p3084_p11), %s467_s10, 4294967168  ;;  %s3542_s2 = sld [smem:[#allocation36_spill]]  ;;  %s475_s21 = sand.u32 1, %s2859_s26  }
 0x16a   : > { %s476_s7 = scalar_lea.sflag [#allocation13], %s475_s21  ;;  %p3543_p8 = scmp.ne.s32.totalorder %s3536_s29, 0 }
 0x16f   : > { %s477_s4 = sand.u32 1, %s3542_s2  }
 0x170   : > { %s3236_s28 = sshll.u32 %s477_s4, 3 }
 0x171   : > { %s479_s12 = scalar_lea.vmem [#allocation12], %s3236_s28 }
 0x172   : > { %2622 = dma.done.wait (%p3543_p8), %s476_s7, 128  }
 0x173   : > { %2624 = vsyncadd (%p3543_p8), %s476_s7, 4294967168  ;;  %p3544_p9 = scmp.eq.s32.totalorder %s2859_s26, 0 }
 0x175   : > { %2626 = dma.done.wait (%p3544_p9), [#allocation13], 16   ;;  %p3545_p11 = pmov %p3544_p9 }
 0x176   : > { %p3546_p1 = pmov %p3544_p9 }
 0x177   : > { %2628 = vsyncadd (%p3545_p11), [#allocation13], 4294967280 }
 0x178   : > { %2630 = dma.done.wait (%p3546_p1), [#allocation16], 272   ;;  %p3547_p10 = pmov %p3546_p1 }
 0x179   : > { %p3548_p12 = pmov %p3546_p1 }
 0x17a   : > { %2632 = vsyncadd (%p3547_p10), [#allocation16], 4294967024 }
 0x17b   : > { %2634 = dma.done.wait (%p3548_p12), [#allocation19], 272   ;;  %p3549_p0 = pmov %p3546_p1 }
 0x17d   : > { %2636 = vsyncadd (%p3549_p0), [#allocation19], 4294967024  ;;  %p3550_p6 = pmov %p3549_p0 }
 0x17e   : > { %p3551_p13 = pmov %p3549_p0 }
 0x17f   : > { %2638 = dma.done.wait (%p3550_p6), [#allocation22], 528  }
 0x180   : > { %2640 = vsyncadd (%p3551_p13), [#allocation22], 4294966768  ;;  %p3552_p2 = pmov %p3549_p0 }
 0x181   : > { %p3553_p5 = pmov %p3549_p0 }
 0x182   : > { %2642 = dma.done.wait (%p3552_p2), [#allocation25], 16  }
 0x183   : > { %2644 = vsyncadd (%p3553_p5), [#allocation25], 4294967280  ;;  %s3263_s5 = scalar_lea.vmem [#allocation26], %s1791_s19  ;;  %s3554_s29 = sld [smem:[#allocation38_spill]] }
 0x189   : > { %p1802_p4 = scmp.ne.s32.totalorder %s3554_s29, 0 }
 0x18a   : > { %v560_v0 = vld [vmem:[%s470_s1] sm:$0xff] (!%p1802_p4)  ;;  %vm561_vm0 = vcmask (!%p1802_p4), 261120   ;;  %vm680_vm1 = vcmask (!%p1802_p4), 7168   ;;  %vm689_vm2 = vcmask (!%p1802_p4), 130048   ;;  %v2713_v8 = vmov (!%p1802_p4), 0.0   ;;  %s2716_s26 = smov (!%p1802_p4), 80  }
 0x18b   : > { %559 = sbr.rel (%p1802_p4) target bundleno = 1046 (0x416), region = 104  ;;  %v562_v1 = vsel (!%p1802_p4), %vm561_vm0, %v560_v0, 0.0  ;;  %v2213_v7 = vld [vmem:[#allocation17] sm:$0xff] (!%p1802_p4)   ;;  %1907 = vmatprep.subr.bf16.mxu0 (!%p1802_p4), %v2713_v8  ;;  %v2714_v9 = vmov (!%p1802_p4), -inf   ;;  %685 = vst.msk [vmem:[#allocation4] sm:$0xff] (!%p1802_p4), %vm680_vm1, %v2713_v8  ;;  %686 = vst.msk [vmem:[#allocation4 + $0x8] sm:$0xff] (!%p1802_p4), %vm680_vm1, %v2713_v8 }
 0x18c   : > { %563 = vadd.xlane.f32.xlu0 (!%p1802_p4), %v562_v1  ;;  %681 = vst.msk [vmem:[#allocation3] sm:$0xff] (!%p1802_p4), %vm680_vm1, %v2714_v9  ;;  %682 = vst.msk [vmem:[#allocation3 + $0x8] sm:$0xff] (!%p1802_p4), %vm680_vm1, %v2714_v9  ;;  %1908 = vmatpush3.bf16.msra.mxu0 (!%p1802_p4), %v2213_v7  ;;  %v2214_v10 = vld [vmem:[#allocation17 + $0x8] sm:$0xff] (!%p1802_p4)   ;;  %vm2715_vm3 = vmmov (!%p1802_p4), 0   ;;  %v1803_v15 = vld [vmem:[#allocation14] ss:$0 sm:$0xff] (!%p1802_p4) }
 0x18d   : > { %683 = vst.msk [vmem:[#allocation3 + $0x10] sm:$0xff] (!%p1802_p4), %vm680_vm1, %v2714_v9  ;;  %684 = vst.msk [vmem:[#allocation3 + $0x18] sm:$0xff] (!%p1802_p4), %vm680_vm1, %v2714_v9  ;;  %1911 = vmatprep.mubr.msk.bf16.mxu0 (!%p1802_p4), %vm2715_vm3, %v2713_v8  ;;  %1909 = vmatprep.subr.bf16.mxu0 (!%p1802_p4), %v2713_v8  ;;  %v1804_v17 = vld [vmem:[#allocation15] ss:$0 sm:$0xff] (!%p1802_p4)  ;;  %v1805_v21 = vld [vmem:[#allocation18] ss:$0 sm:$0xff] (!%p1802_p4) }
 0x18e   : > { %687 = vst.msk [vmem:[#allocation4 + $0x10] sm:$0xff] (!%p1802_p4), %vm680_vm1, %v2713_v8  ;;  %688 = vst.msk [vmem:[#allocation4 + $0x18] sm:$0xff] (!%p1802_p4), %vm680_vm1, %v2713_v8  ;;  %vm660_vm4 = vcmask (!%p1802_p4), 125952   ;;  %s2717_s14 = smov (!%p1802_p4), 112   ;;  %s2718_s9 = smov (!%p1802_p4), 96  }
 0x18f   : > { %690 = vst.msk [vmem:[#allocation5] sm:$0xff] (!%p1802_p4), %vm689_vm2, %v2713_v8  ;;  %691 = vst.msk [vmem:[#allocation5 + $0x8] sm:$0xff] (!%p1802_p4), %vm689_vm2, %v2713_v8 }
 0x190   : > { %692 = vst.msk [vmem:[#allocation5 + $0x10] sm:$0xff] (!%p1802_p4), %vm689_vm2, %v2713_v8  ;;  %693 = vst.msk [vmem:[#allocation5 + $0x18] sm:$0xff] (!%p1802_p4), %vm689_vm2, %v2713_v8  ;;  %1910 = vmatpush3.bf16.msra.mxu0 (!%p1802_p4), %v2214_v10 }
 0x219   : > { %v564_v2 = vpop.xlane.xlu0 %563 }
 0x21a   : > { %v566_v3 = vmul.f32 0.03125, %v564_v2 }
 0x21c   : > { %v567_v4 = vsub.f32 %v560_v0, %v566_v3 }
 0x21e   : > { %v568_v5 = vmul.f32 %v567_v4, %v567_v4 }
 0x220   : > { %v569_v6 = vsel %vm561_vm0, %v568_v5, 0.0 }
 0x221   : > { %570 = vadd.xlane.f32.xlu0 %v569_v6 }
 0x2ae   : > { %v571_v11 = vpop.xlane.xlu0 %570 }
 0x2af   : > { %v572_v12 = vmul.f32 0.03125, %v571_v11 }
 0x2b1   : > { %v573_v13 = vadd.f32 1e-05, %v572_v12 }
 0x2b3   : > { %2215 = vrsqrt.f32 %v573_v13 }
 0x2bd   : > { %v2216_v14 = vpop.eup %2215 }
 0x2be   : > { %v575_v16 = vmul.f32 %v2216_v14, %v567_v4 }
 0x2c0   : > { %v583_v18 = vmul.f32 %v1803_v15, %v575_v16 }
 0x2c2   : > { %v591_v19 = vadd.f32 %v1804_v17, %v583_v18 }
 0x2c4   : > { %v592_v20 = vpack.c.bf16 %v591_v19, %v591_v19 }
 0x2c6   : > { %1912 = vmatmul.mubr.msk.bf16.vlgmr.msra.gmra.mrb[0].mxu0 %vm561_vm0, %v592_v20 }
 0x399   : > { %v653_v22 = vpop.f32.mrb[0].mxu0 }
 0x39a   : > { %v654_v23 = vadd.f32 %v1805_v21, %v653_v22  ;;  %v1913_v24 = vpop.f32.mrb[1].mxu0 }
 0x39b   : > { %v656_v25 = vpop.f32.mrb[2].mxu0 }
 0x39c   : > { %v659_v26 = vpack.c.bf16 %v654_v23, %v654_v23  ;;  %v1914_v27 = vpop.f32.mrb[3].mxu0 }
 0x39e   : > { %675 = vrot.lane.b32.xlu0 %v659_v26, %s2716_s26  ;;  %665 = vrot.lane.b32.xlu1 %v659_v26, %s2717_s14  ;;  %661 = vst.msk [vmem:[#allocation2] sm:$0xf] %vm660_vm4, %v659_v26 }
 0x3a2   : > { %670 = vrot.lane.b32.xlu1 %v659_v26, %s2718_s9 }
 0x410   : > { %v676_v28 = vpop.permute.xlu0 %675  ;;  %v666_v29 = vpop.permute.xlu1 %665 }
 0x411   : > { %679 = vst.msk [vmem:[#allocation2 + $0xc] sm:$0xf] %vm660_vm4, %v676_v28  ;;  %669 = vst.msk [vmem:[#allocation2 + $0x4] sm:$0xf] %vm660_vm4, %v666_v29 }
 0x414   : > { %v671_v30 = vpop.permute.xlu1 %670 }
 0x415   : > { %674 = vst.msk [vmem:[#allocation2 + $0x8] sm:$0xf] %vm660_vm4, %v671_v30 }
 0x416 PF: > { %s3555_s11 = sld [smem:[#allocation39_spill]] }
 0x41c   : > { %p1810_p7 = scmp.ne.s32.totalorder %s3555_s11, 0 }
 0x41d   : > { %v698_v31 = vld [vmem:[%s479_s12] sm:$0xff] (!%p1810_p7)  ;;  %vm699_vm5 = vcmask (!%p1810_p7), 261120   ;;  %v2719_v39 = vmov (!%p1810_p7), 0.0   ;;  %vm2720_vm6 = vmmov (!%p1810_p7), 0   ;;  %s3556_s27 = sld [smem:[#allocation38_spill]] (!%p1810_p7)  ;;  %vm801_vm7 = vcmask (!%p1810_p7), 125952  }
 0x41e   : > { %697 = sbr.rel (%p1810_p7) target bundleno = 1721 (0x6b9), region = 108  ;;  %v700_v32 = vsel (!%p1810_p7), %vm699_vm5, %v698_v31, 0.0  ;;  %v2217_v38 = vld [vmem:[#allocation20] sm:$0xff] (!%p1810_p7)   ;;  %1915 = vmatprep.subr.bf16.mxu0 (!%p1810_p7), %v2719_v39  ;;  %1919 = vmatprep.mubr.msk.bf16.mxu0 (!%p1810_p7), %vm2720_vm6, %v2719_v39  ;;  %v2218_v40 = vld [vmem:[#allocation20 + $0x8] sm:$0xff] (!%p1810_p7)   ;;  %v1813_v51 = vld [vmem:[#allocation21] ss:$0 sm:$0xff] (!%p1810_p7) }
 0x41f   : > { %701 = vadd.xlane.f32.xlu0 (!%p1810_p7), %v700_v32  ;;  %1916 = vmatpush3.bf16.msra.mxu0 (!%p1810_p7), %v2217_v38  ;;  %v1811_v45 = vld [vmem:[#allocation14] ss:$0 sm:$0xff] (!%p1810_p7)  ;;  %v1812_v47 = vld [vmem:[#allocation15] ss:$0 sm:$0xff] (!%p1810_p7)  ;;  %s2721_s10 = smov (!%p1810_p7), 48   ;;  %s2722_s1 = smov (!%p1810_p7), 64  }
 0x420   : > { %1917 = vmatprep.subr.bf16.mxu0 (!%p1810_p7), %v2719_v39  ;;  %s2723_s21 = smov (!%p1810_p7), 112   ;;  %s2724_s4 = smov (!%p1810_p7), 96  }
 0x421   : > { %s2725_s28 = smov (!%p1810_p7), 32   ;;  %s2726_s7 = smov (!%p1810_p7), 80  }
 0x422   : > { %s2727_s12 = smov (!%p1810_p7), 16  }
 0x423   : > { %1918 = vmatpush3.bf16.msra.mxu0 (!%p1810_p7), %v2218_v40  ;;  %s1866_s19 = sshll.u32 (!%p1810_p7), %s3556_s27, 4 }
 0x424   : > { %s800_s2 = scalar_lea.vmem (!%p1810_p7), [#allocation7], %s1866_s19  ;;  %s810_s29 = scalar_lea.vmem (!%p1810_p7), [#allocation8], %s1866_s19 }
 0x4ac   : > { %v702_v33 = vpop.xlane.xlu0 %701 }
 0x4ad   : > { %v704_v34 = vmul.f32 0.03125, %v702_v33 }
 0x4af   : > { %v705_v35 = vsub.f32 %v698_v31, %v704_v34 }
 0x4b1   : > { %v706_v36 = vmul.f32 %v705_v35, %v705_v35 }
 0x4b3   : > { %v707_v37 = vsel %vm699_vm5, %v706_v36, 0.0 }
 0x4b4   : > { %708 = vadd.xlane.f32.xlu0 %v707_v37 }
 0x541   : > { %v709_v41 = vpop.xlane.xlu0 %708 }
 0x542   : > { %v710_v42 = vmul.f32 0.03125, %v709_v41 }
 0x544   : > { %v711_v43 = vadd.f32 1e-05, %v710_v42 }
 0x546   : > { %2219 = vrsqrt.f32 %v711_v43 }
 0x550   : > { %v2220_v44 = vpop.eup %2219 }
 0x551   : > { %v713_v46 = vmul.f32 %v2220_v44, %v705_v35 }
 0x553   : > { %v721_v48 = vmul.f32 %v1811_v45, %v713_v46 }
 0x555   : > { %v729_v49 = vadd.f32 %v1812_v47, %v721_v48 }
 0x557   : > { %v730_v50 = vpack.c.bf16 %v729_v49, %v729_v49 }
 0x559   : > { %1920 = vmatmul.mubr.msk.bf16.vlgmr.msra.gmra.mrb[0].mxu0 %vm699_vm5, %v730_v50 }
 0x62c   : > { %v791_v52 = vpop.f32.mrb[0].mxu0 }
 0x62d   : > { %v792_v53 = vadd.f32 %v1813_v51, %v791_v52  ;;  %v1921_v54 = vpop.f32.mrb[1].mxu0 }
 0x62e   : > { %v794_v55 = vpop.f32.mrb[2].mxu0 }
 0x62f   : > { %v797_v56 = vpack.c.bf16 %v792_v53, %v792_v53  ;;  %v1922_v57 = vpop.f32.mrb[3].mxu0 }
 0x631   : > { %819 = vrot.lane.b32.xlu0 %v797_v56, %s2721_s10  ;;  %806 = vrot.lane.b32.xlu1 %v797_v56, %s2722_s1  ;;  %802 = vst.msk [vmem:[%s800_s2] sm:$0xf] %vm801_vm7, %v797_v56 }
 0x635   : > { %812 = vrot.lane.b32.xlu1 %v797_v56, %s2723_s21 }
 0x639   : > { %825 = vrot.lane.b32.xlu1 %v797_v56, %s2724_s4 }
 0x63d   : > { %832 = vrot.lane.b32.xlu1 %v797_v56, %s2725_s28 }
 0x641   : > { %838 = vrot.lane.b32.xlu1 %v797_v56, %s2726_s7 }
 0x645   : > { %845 = vrot.lane.b32.xlu1 %v797_v56, %s2727_s12 }
 0x6a3   : > { %v820_v58 = vpop.permute.xlu0 %819  ;;  %v807_v59 = vpop.permute.xlu1 %806 }
 0x6a4   : > { %1826 = vst.msk [vmem:[%s810_s29 + $0x4] sm:$0xf] %vm801_vm7, %v820_v58  ;;  %811 = vst.msk [vmem:[%s810_s29] sm:$0xf] %vm801_vm7, %v807_v59 }
 0x6a7   : > { %v813_v60 = vpop.permute.xlu1 %812 }
 0x6a8   : > { %1823 = vst.msk [vmem:[%s800_s2 + $0x4] sm:$0xf] %vm801_vm7, %v813_v60 }
 0x6ab   : > { %v826_v61 = vpop.permute.xlu1 %825 }
 0x6ac   : > { %1829 = vst.msk [vmem:[%s800_s2 + $0x8] sm:$0xf] %vm801_vm7, %v826_v61 }
 0x6af   : > { %v833_v62 = vpop.permute.xlu1 %832 }
 0x6b0   : > { %1832 = vst.msk [vmem:[%s810_s29 + $0x8] sm:$0xf] %vm801_vm7, %v833_v62 }
 0x6b3   : > { %v839_v63 = vpop.permute.xlu1 %838 }
 0x6b4   : > { %1835 = vst.msk [vmem:[%s800_s2 + $0xc] sm:$0xf] %vm801_vm7, %v839_v63 }
 0x6b7   : > { %v846_v0 = vpop.permute.xlu1 %845 }
 0x6b8   : > { %1838 = vst.msk [vmem:[%s810_s29 + $0xc] sm:$0xf] %vm801_vm7, %v846_v0 }
 0x6b9 PF: > { %s3557_s26 = sld [smem:[#allocation38_spill]]  ;;  %vm868_vm8 = vcmask 130048   ;;  %v2728_v1 = vmov 0.0   ;;  %vm2729_vm9 = vmmov 0   ;;  %v864_v8 = vld [vmem:[#allocation2] sm:$0xf] }
 0x6ba   : > { %1923 = vmatprep.subr.bf16.mxu0 %v2728_v1  ;;  %1929 = vmatprep.subr.bf16.mxu1 %v2728_v1  ;;  %v865_v9 = vld [vmem:[#allocation2 + $0x4] sm:$0xf]  ;;  %v866_v12 = vld [vmem:[#allocation2 + $0x8] sm:$0xf]  ;;  %v867_v13 = vld [vmem:[#allocation2 + $0xc] sm:$0xf] }
 0x6bb   : > { %1925 = vmatprep.mubr.msk.bf16.mxu0 %vm2729_vm9, %v2728_v1  ;;  %1931 = vmatprep.mubr.msk.bf16.mxu1 %vm2729_vm9, %v2728_v1  ;;  %vm1057_vm10 = vcmask 64512   ;;  %v2730_v34 = vmov 0   ;;  %v1053_v35 = vld [vmem:[#allocation3] sm:$0xff]  ;;  %vm1142_vm11 = vcmask 7168   ;;  %v3333_v38 = vld [vmem:[#allocation3 + $0x8] sm:$0xff]  ;;  %v1055_v43 = vld [vmem:[#allocation3 + $0x10] sm:$0xff] }
 0x6bc   : > { %2221 = vset.pattern.permute.xlu0 %v2730_v34  ;;  %2222 = vset.pattern.permute.xlu1 %v2730_v34  ;;  %v3344_v47 = vld [vmem:[#allocation3 + $0x18] sm:$0xff]  ;;  %vm1182_vm12 = vcmask 1043456  }
 0x6bf   : > { %s1875_s14 = sshll.u32 %s3557_s26, 4  ;;  %p1850_p3 = scmp.ne.s32.totalorder %s3557_s26, 1 }
 0x6c0   : > { %s853_s9 = scalar_lea.vmem [#allocation7], %s1875_s14  ;;  %s859_s11 = scalar_lea.vmem [#allocation8], %s1875_s14  ;;  %vm2733_vm13 = vmmov (!%p1850_p3), 0   ;;  %vm1417_vm14 = vcmask (!%p1850_p3), 125952   ;;  %vm1426_vm15 = vcmask (!%p1850_p3), 257152   ;;  %vm1435_vm0 = vcmask (!%p1850_p3), 388352  }
 0x6c1   : > { %v854_v2 = vld [vmem:[%s853_s9] sm:$0xf]  ;;  %v855_v3 = vld [vmem:[%s853_s9 + $0x4] sm:$0xf]  ;;  %v856_v6 = vld [vmem:[%s853_s9 + $0x8] sm:$0xf] }
 0x6c2   : > { %v873_v4 = vsel %vm868_vm8, %v854_v2, 0  ;;  %v919_v5 = vsel %vm868_vm8, %v855_v3, 0  ;;  %v857_v7 = vld [vmem:[%s853_s9 + $0xc] sm:$0xf]  ;;  %v965_v10 = vsel %vm868_vm8, %v856_v6, 0  ;;  %s2734_s27 = smov (!%p1850_p3), 16  }
 0x6c3   : > { %1924 = vmatpush3.bf16.xpose.msra.mxu0 %v873_v4  ;;  %1930 = vmatpush3.bf16.xpose.msra.mxu1 %v919_v5  ;;  %v1011_v11 = vsel %vm868_vm8, %v857_v7, 0  ;;  %v860_v52 = vld [vmem:[%s859_s11] sm:$0xf]  ;;  %v861_v55 = vld [vmem:[%s859_s11 + $0x4] sm:$0xf]  ;;  %s2735_s19 = smov (!%p1850_p3), 32  }
 0x6c4   : > { %1935 = vmatprep.subr.bf16.mxu0 %v2728_v1  ;;  %1941 = vmatprep.subr.bf16.mxu1 %v2728_v1  ;;  %v1184_v53 = vsel %vm1182_vm12, %v860_v52, 0  ;;  %v1230_v56 = vsel %vm1182_vm12, %v861_v55, 0  ;;  %v862_v57 = vld [vmem:[%s859_s11 + $0x8] sm:$0xf]  ;;  %v863_v59 = vld [vmem:[%s859_s11 + $0xc] sm:$0xf] }
 0x6c5   : > { %v1276_v58 = vsel %vm1182_vm12, %v862_v57, 0  ;;  %v1322_v60 = vsel %vm1182_vm12, %v863_v59, 0  ;;  %v1149_v55 = vld [vmem:[#allocation5 + $0x10] sm:$0xff]  ;;  %s2736_s10 = smov (!%p1850_p3), 48   ;;  %vm1444_vm1 = vcmask (!%p1850_p3), 519552   ;;  %vm1486_vm2 = vcmask (!%p1850_p3), 523264  }
 0x6c6   : > { %vm1530_vm3 = vcmask (!%p1850_p3), 261120  }
 0x6ca   : > { %1926 = vmatmul.mubr.msk.bf16.vlgmr.msra.gmra.mrb[0].mxu0 %vm868_vm8, %v864_v8  ;;  %1932 = vmatmul.mubr.msk.bf16.vlgmr.msra.gmra.mrb[0].mxu1 %vm868_vm8, %v865_v9 }
 0x6cb   : > { %1936 = vmatpush3.bf16.xpose.msra.mxu0 %v965_v10  ;;  %1942 = vmatpush3.bf16.xpose.msra.mxu1 %v1011_v11 }
 0x6cc   : > { %1937 = vmatprep.mubr.msk.bf16.mxu0 %vm2729_vm9, %v2728_v1  ;;  %1943 = vmatprep.mubr.msk.bf16.mxu1 %vm2729_vm9, %v2728_v1 }
 0x6cd   : > { %1947 = vmatprep.subr.bf16.mxu0 %v2728_v1  ;;  %1953 = vmatprep.subr.bf16.mxu1 %v2728_v1 }
 0x6d2   : > { %1938 = vmatmul.mubr.msk.bf16.vlgmr.msra.gmra.mrb[4].mxu0 %vm868_vm8, %v866_v12  ;;  %1944 = vmatmul.mubr.msk.bf16.vlgmr.msra.gmra.mrb[4].mxu1 %vm868_vm8, %v867_v13 }
 0x6d3   : > { %1949 = vmatprep.mubr.msk.bf16.mxu0 %vm2729_vm9, %v2728_v1  ;;  %1955 = vmatprep.mubr.msk.bf16.mxu1 %vm2729_vm9, %v2728_v1 }
 0x6d4   : > { %1948 = vmatpush3.bf16.msra.mxu0 %v1184_v53  ;;  %1954 = vmatpush3.bf16.msra.mxu1 %v1230_v56 }
 0x6d5   : > { %1959 = vmatprep.subr.bf16.mxu0 %v2728_v1  ;;  %1965 = vmatprep.subr.bf16.mxu1 %v2728_v1 }
 0x79d   : > { %v3317_v14 = vpop.f32.mrb[0].mxu0  ;;  %v3319_v15 = vpop.f32.mrb[0].mxu1 }
 0x79e   : > { %v1927_v16 = vpop.f32.mrb[1].mxu0  ;;  %v1058_v17 = vsel %vm1057_vm10, %v3317_v14, -inf  ;;  %v1933_v18 = vpop.f32.mrb[1].mxu1  ;;  %v1061_v23 = vsel %vm1057_vm10, %v3319_v15, -inf }
 0x79f   : > { %1059 = vmax.xlane.f32.xlu0 %v1058_v17  ;;  %v912_v19 = vpop.f32.mrb[2].mxu0  ;;  %v958_v20 = vpop.f32.mrb[2].mxu1 }
 0x7a0   : > { %v1928_v21 = vpop.f32.mrb[3].mxu0  ;;  %v1934_v22 = vpop.f32.mrb[3].mxu1 }
 0x7a3   : > { %1062 = vmax.xlane.f32.xlu0 %v1061_v23 }
 0x7a5   : > { %v3325_v24 = vpop.f32.mrb[4].mxu0  ;;  %v3327_v25 = vpop.f32.mrb[4].mxu1 }
 0x7a6   : > { %v1939_v26 = vpop.f32.mrb[5].mxu0  ;;  %v1064_v27 = vsel %vm1057_vm10, %v3325_v24, -inf  ;;  %v1945_v28 = vpop.f32.mrb[5].mxu1  ;;  %v1067_v33 = vsel %vm1057_vm10, %v3327_v25, -inf }
 0x7a7   : > { %1065 = vmax.xlane.f32.xlu1 %v1064_v27  ;;  %v1004_v29 = vpop.f32.mrb[6].mxu0  ;;  %v1050_v30 = vpop.f32.mrb[6].mxu1  ;;  %v1118_v28 = vld [vmem:[#allocation4] sm:$0xff] }
 0x7a8   : > { %v1940_v31 = vpop.f32.mrb[7].mxu0  ;;  %v1946_v32 = vpop.f32.mrb[7].mxu1 }
 0x7a9   : > { %v1119_v31 = vld [vmem:[#allocation4 + $0x8] sm:$0xff] }
 0x7ab   : > { %1068 = vmax.xlane.f32.xlu1 %v1067_v33 }
 0x82c   : > { %v1060_v36 = vpop.xlane.xlu0 %1059 }
 0x82d   : > { %v1070_v37 = vmax.f32 %v1053_v35, %v1060_v36 }
 0x82f   : > { %v1074_v39 = vsub.f32 %v1053_v35, %v1070_v37  ;;  %1372 = vst.msk [vmem:[#allocation3] sm:$0xff] %vm1142_vm11, %v1070_v37  ;;  %1088 = vperm.xlu0 %2221, %v1070_v37   ;;  %v1120_v37 = vld [vmem:[#allocation4 + $0x10] sm:$0xff] }
 0x830   : > { %v1063_v40 = vpop.xlane.xlu0 %1062 }
 0x831   : > { %v1078_v41 = vmul.f32 1.442695, %v1074_v39  ;;  %v3337_v42 = vmax.f32 %v3333_v38, %v1063_v40  ;;  %v1121_v40 = vld [vmem:[#allocation4 + $0x18] sm:$0xff] }
 0x833   : > { %2223 = vpow2.f32 %v1078_v41  ;;  %v1075_v44 = vsub.f32 %v3333_v38, %v3337_v42  ;;  %1373 = vst.msk [vmem:[#allocation3 + $0x8] sm:$0xff] %vm1142_vm11, %v3337_v42  ;;  %1093 = vperm.xlu1 %2222, %v3337_v42  }
 0x834   : > { %v1066_v45 = vpop.xlane.xlu1 %1065 }
 0x835   : > { %v1072_v46 = vmax.f32 %v1055_v43, %v1066_v45  ;;  %v1080_v20 = vmul.f32 1.442695, %v1075_v44  ;;  %v1147_v45 = vld [vmem:[#allocation5] sm:$0xff] }
 0x837   : > { %v1076_v48 = vsub.f32 %v1055_v43, %v1072_v46  ;;  %1374 = vst.msk [vmem:[#allocation3 + $0x10] sm:$0xff] %vm1142_vm11, %v1072_v46  ;;  %1098 = vperm.xlu1 %2222, %v1072_v46  }
 0x838   : > { %v1069_v49 = vpop.xlane.xlu1 %1068 }
 0x839   : > { %v3348_v50 = vmax.f32 %v3344_v47, %v1069_v49 }
 0x83b   : > { %v1077_v51 = vsub.f32 %v3344_v47, %v3348_v50  ;;  %1375 = vst.msk [vmem:[#allocation3 + $0x18] sm:$0xff] %vm1142_vm11, %v3348_v50  ;;  %1103 = vperm.xlu1 %2222, %v3348_v50   ;;  %v1148_v47 = vld [vmem:[#allocation5 + $0x8] sm:$0xff] }
 0x83d   : > { %v3357_v54 = vpop.eup %2223 }
 0x83e   : > { %v1122_v29 = vmul.f32 %v3357_v54, %v1118_v28 }
 0x83f   : > { %1153 = vperm.xlu1 %2222, %v3357_v54  }
 0x8ae   : > { %v1089_v61 = vpop.permute.xlu0 %1088 }
 0x8af   : > { %v1106_v62 = vsub.f32 %v3317_v14, %v1089_v61  ;;  %v1082_v14 = vmul.f32 1.442695, %v1076_v48 }
 0x8b1   : > { %v1110_v63 = vmul.f32 1.442695, %v1106_v62  ;;  %v1150_v62 = vld [vmem:[#allocation5 + $0x18] sm:$0xff] }
 0x8b2   : > { %v1094_v0 = vpop.permute.xlu1 %1093 }
 0x8b3   : > { %2225 = vpow2.f32 %v1110_v63  ;;  %v1107_v2 = vsub.f32 %v3319_v15, %v1094_v0 }
 0x8b5   : > { %v1112_v3 = vmul.f32 1.442695, %v1107_v2 }
 0x8b6   : > { %v1099_v4 = vpop.permute.xlu1 %1098 }
 0x8b7   : > { %2227 = vpow2.f32 %v1112_v3  ;;  %v1108_v5 = vsub.f32 %v3325_v24, %v1099_v4 }
 0x8b9   : > { %v1114_v6 = vmul.f32 1.442695, %v1108_v5 }
 0x8ba   : > { %v1104_v7 = vpop.permute.xlu1 %1103 }
 0x8bb   : > { %2229 = vpow2.f32 %v1114_v6  ;;  %v1109_v8 = vsub.f32 %v3327_v25, %v1104_v7  ;;  %v1084_v25 = vmul.f32 1.442695, %v1077_v51 }
 0x8bd   : > { %v2226_v9 = vpop.eup %2225  ;;  %v1116_v10 = vmul.f32 1.442695, %v1109_v8 }
 0x8be   : > { %v1126_v11 = vsel %vm1057_vm10, %v2226_v9, 0.0  ;;  %v1175_v12 = vpack.c.bf16 %v2226_v9, %v2226_v9  ;;  %v1154_v27 = vpop.permute.xlu1 %1153 }
 0x8bf   : > { %2231 = vpow2.f32 %v1116_v10  ;;  %1127 = vadd.xlane.f32.xlu1 %v1126_v11  ;;  %v1171_v46 = vmul.f32 %v1154_v27, %v1147_v45  ;;  %v1854_v45 = vld [vmem:[#allocation24] ss:$0 sm:$0xff] (!%p1850_p3) }
 0x8c0   : > { %1950 = vmatmul.mubr.msk.bf16.vlgmr.msra.gmra.mrb[8].mxu0 %vm1057_vm10, %v1175_v12  ;;  %2233 = vpow2.f32 %v1082_v14 }
 0x8c1   : > { %v2228_v13 = vpop.eup %2227  ;;  %1960 = vmatpush3.bf16.msra.mxu0 %v1276_v58  ;;  %1961 = vmatprep.mubr.msk.bf16.mxu0 %vm2729_vm9, %v2728_v1  ;;  %2235 = vpow2.f32 %v1080_v20 }
 0x8c2   : > { %v1129_v15 = vsel %vm1057_vm10, %v2228_v13, 0.0  ;;  %v1176_v16 = vpack.c.bf16 %v2228_v13, %v2228_v13  ;;  %2237 = vpow2.f32 %v1084_v25  ;;  %v2244_v25 = vld [vmem:[#allocation23 + $0x18] sm:$0xff] (!%p1850_p3)  }
 0x8c3   : > { %1130 = vadd.xlane.f32.xlu0 %v1129_v15  ;;  %v2731_v15 = vmov (!%p1850_p3), 0  }
 0x8c4   : > { %1956 = vmatmul.mubr.msk.bf16.vlgmr.msra.gmra.mrb[8].mxu1 %vm1057_vm10, %v1176_v16 }
 0x8c5   : > { %v2230_v17 = vpop.eup %2229  ;;  %1966 = vmatpush3.bf16.msra.mxu1 %v1322_v60  ;;  %1967 = vmatprep.mubr.msk.bf16.mxu1 %vm2729_vm9, %v2728_v1 }
 0x8c6   : > { %v1177_v18 = vpack.c.bf16 %v2230_v17, %v2230_v17  ;;  %v1132_v24 = vsel %vm1057_vm10, %v2230_v17, 0.0 }
 0x8c8   : > { %1962 = vmatmul.mubr.msk.bf16.vlgmr.msra.gmra.mrb[12].mxu0 %vm1057_vm10, %v1177_v18 }
 0x8c9   : > { %v2232_v19 = vpop.eup %2231 }
 0x8ca   : > { %v1178_v21 = vpack.c.bf16 %v2232_v19, %v2232_v19  ;;  %v2234_v22 = vpop.eup %2233  ;;  %v1135_v1 = vsel %vm1057_vm10, %v2232_v19, 0.0 }
 0x8cb   : > { %v2236_v23 = vpop.eup %2235  ;;  %v1124_v38 = vmul.f32 %v2234_v22, %v1120_v37 }
 0x8cc   : > { %1968 = vmatmul.mubr.msk.bf16.vlgmr.msra.gmra.mrb[12].mxu1 %vm1057_vm10, %v1178_v21  ;;  %v2238_v26 = vpop.eup %2237  ;;  %v1123_v33 = vmul.f32 %v2236_v23, %v1119_v31  ;;  %v2241_v21 = vld [vmem:[#allocation23] sm:$0xff] (!%p1850_p3)  }
 0x8cd   : > { %v1125_v42 = vmul.f32 %v2238_v26, %v1121_v40 }
 0x8d0   : > { %1163 = vperm.xlu1 %2222, %v2234_v22   ;;  %v2732_v22 = vmov (!%p1850_p3), 0.0  }
 0x8d1   : > { %1971 = vmatprep.subr.bf16.mxu0 (!%p1850_p3), %v2732_v22  ;;  %1979 = vmatprep.mubr.msk.bf16.mxu0 (!%p1850_p3), %vm2733_vm13, %v2732_v22 }
 0x8d2   : > { %1972 = vmatpush3.bf16.msra.mxu0 (!%p1850_p3), %v2241_v21 }
 0x8d3   : > { %1973 = vmatprep.subr.bf16.mxu0 (!%p1850_p3), %v2732_v22 }
 0x8d9   : > { %1158 = vperm.xlu0 %2221, %v2236_v23   ;;  %v2242_v23 = vld [vmem:[#allocation23 + $0x8] sm:$0xff] (!%p1850_p3)  }
 0x8da   : > { %1974 = vmatpush3.bf16.msra.mxu0 (!%p1850_p3), %v2242_v23 }
 0x8db   : > { %1975 = vmatprep.subr.bf16.mxu0 (!%p1850_p3), %v2732_v22 }
 0x8dd   : > { %2239 = vset.pattern.permute.xlu0 (!%p1850_p3), %v2731_v15 }
 0x8f4   : > { %1133 = vadd.xlane.f32.xlu1 %v1132_v24  ;;  %v2243_v24 = vld [vmem:[#allocation23 + $0x10] sm:$0xff] (!%p1850_p3)  }
 0x8f5   : > { %1976 = vmatpush3.bf16.msra.mxu0 (!%p1850_p3), %v2243_v24 }
 0x8f6   : > { %1977 = vmatprep.subr.bf16.mxu0 (!%p1850_p3), %v2732_v22 }
 0x8f8   : > { %1136 = vadd.xlane.f32.xlu1 %v1135_v1 }
 0x8f9   : > { %1978 = vmatpush3.bf16.msra.mxu0 (!%p1850_p3), %v2244_v25 }
 0x909   : > { %1168 = vperm.xlu1 %2222, %v2238_v26  }
 0x90d   : > { %2240 = vset.pattern.permute.xlu1 (!%p1850_p3), %v2731_v15 }
 0x94c   : > { %v1128_v30 = vpop.xlane.xlu1 %1127 }
 0x94d   : > { %v1138_v32 = vadd.f32 %v1128_v30, %v1122_v29 }
 0x94f   : > { %1143 = vst.msk [vmem:[#allocation4] sm:$0xff] %vm1142_vm11, %v1138_v32 }
 0x950   : > { %v1131_v34 = vpop.xlane.xlu0 %1130  ;;  %v1164_v36 = vpop.permute.xlu1 %1163 }
 0x951   : > { %v1139_v35 = vadd.f32 %v1131_v34, %v1123_v33  ;;  %v1173_v60 = vmul.f32 %v1164_v36, %v1149_v55 }
 0x953   : > { %1144 = vst.msk [vmem:[#allocation4 + $0x8] sm:$0xff] %vm1142_vm11, %v1139_v35 }
 0x956   : > { %v1384_v16 = vld [vmem:[#allocation4] sm:$0xff] (!%p1850_p3) }
 0x958   : > { %v1159_v48 = vpop.permute.xlu0 %1158 }
 0x959   : > { %v1172_v53 = vmul.f32 %v1159_v48, %v1148_v47 }
 0x95a   : > { %v1385_v12 = vld [vmem:[#allocation4 + $0x8] sm:$0xff] (!%p1850_p3) }
 0x95b   : > { %2245 = vrcp.f32 (!%p1850_p3), %v1385_v12 }
 0x965   : > { %v2246_v17 = vpop.eup (!%p1850_p3), %2245 }
 0x966   : > { %1399 = vperm.xlu0 (!%p1850_p3), %2239, %v2246_v17  }
 0x981   : > { %v1134_v39 = vpop.xlane.xlu1 %1133 }
 0x982   : > { %v1140_v41 = vadd.f32 %v1134_v39, %v1124_v38 }
 0x984   : > { %1145 = vst.msk [vmem:[#allocation4 + $0x10] sm:$0xff] %vm1142_vm11, %v1140_v41 }
 0x985   : > { %v1137_v43 = vpop.xlane.xlu1 %1136 }
 0x986   : > { %v1141_v44 = vadd.f32 %v1137_v43, %v1125_v42 }
 0x988   : > { %1146 = vst.msk [vmem:[#allocation4 + $0x18] sm:$0xff] %vm1142_vm11, %v1141_v44 }
 0x989   : > { %v1169_v63 = vpop.permute.xlu1 %1168 }
 0x98a   : > { %v1174_v5 = vmul.f32 %v1169_v63, %v1150_v62 }
 0x98b   : > { %v1386_v14 = vld [vmem:[#allocation4 + $0x10] sm:$0xff] (!%p1850_p3) }
 0x98f   : > { %v1387_v13 = vld [vmem:[#allocation4 + $0x18] sm:$0xff] (!%p1850_p3) }
 0x990   : > { %2247 = vrcp.f32 (!%p1850_p3), %v1387_v13 }
 0x991   : > { %2249 = vrcp.f32 (!%p1850_p3), %v1386_v14 }
 0x992   : > { %2251 = vrcp.f32 (!%p1850_p3), %v1384_v16 }
 0x993   : > { %v1220_v49 = vpop.f32.mrb[8].mxu0 }
 0x994   : > { %v1364_v50 = vadd.f32 %v1220_v49, %v1171_v46  ;;  %v1951_v51 = vpop.f32.mrb[9].mxu0 }
 0x995   : > { %v1223_v52 = vpop.f32.mrb[10].mxu0 }
 0x996   : > { %1368 = vst.msk [vmem:[#allocation5] sm:$0xff] %vm868_vm8, %v1364_v50  ;;  %v1952_v54 = vpop.f32.mrb[11].mxu0 }
 0x997   : > { %v1266_v56 = vpop.f32.mrb[8].mxu1 }
 0x998   : > { %v1365_v57 = vadd.f32 %v1266_v56, %v1172_v53  ;;  %v1957_v58 = vpop.f32.mrb[9].mxu1 }
 0x999   : > { %v1269_v59 = vpop.f32.mrb[10].mxu1 }
 0x99a   : > { %1369 = vst.msk [vmem:[#allocation5 + $0x8] sm:$0xff] %vm868_vm8, %v1365_v57  ;;  %v1958_v61 = vpop.f32.mrb[11].mxu1  ;;  %v2248_v18 = vpop.eup (!%p1850_p3), %2247 }
 0x99b   : > { %v1312_v0 = vpop.f32.mrb[12].mxu0  ;;  %v2250_v19 = vpop.eup (!%p1850_p3), %2249  ;;  %1409 = vperm.xlu1 (!%p1850_p3), %2240, %v2248_v18  }
 0x99c   : > { %v1366_v2 = vadd.f32 %v1312_v0, %v1173_v60  ;;  %v1963_v3 = vpop.f32.mrb[13].mxu0  ;;  %1379 = sbr.rel (%p1850_p3) target bundleno = 2931 (0xb73), region = 112  ;;  %v2252_v20 = vpop.eup (!%p1850_p3), %2251  ;;  %1404 = vperm.xlu0 (!%p1850_p3), %2239, %v2250_v19  }
 0x99d   : > { %v1315_v4 = vpop.f32.mrb[14].mxu0  ;;  %v1380_v33 = vld [vmem:[#allocation5] sm:$0xff] (!%p1850_p3) }
 0x99e   : > { %1370 = vst.msk [vmem:[#allocation5 + $0x10] sm:$0xff] %vm868_vm8, %v1366_v2  ;;  %v1964_v6 = vpop.f32.mrb[15].mxu0 }
 0x99f   : > { %v1358_v7 = vpop.f32.mrb[12].mxu1  ;;  %1394 = vperm.xlu1 (!%p1850_p3), %2240, %v2252_v20  }
 0x9a0   : > { %v1367_v8 = vadd.f32 %v1358_v7, %v1174_v5  ;;  %v1969_v9 = vpop.f32.mrb[13].mxu1 }
 0x9a1   : > { %v1361_v10 = vpop.f32.mrb[14].mxu1  ;;  %v1381_v1 = vld [vmem:[#allocation5 + $0x8] sm:$0xff] (!%p1850_p3) }
 0x9a2   : > { %1371 = vst.msk [vmem:[#allocation5 + $0x18] sm:$0xff] %vm868_vm8, %v1367_v8  ;;  %v1970_v11 = vpop.f32.mrb[15].mxu1 }
 0x9a5   : > { %v1382_v31 = vld [vmem:[#allocation5 + $0x10] sm:$0xff] }
 0x9a9   : > { %v1383_v26 = vld [vmem:[#allocation5 + $0x18] sm:$0xff] }
 0x9e5   : > { %v1400_v27 = vpop.permute.xlu0 %1399 }
 0x9e6   : > { %v1413_v28 = vmul.f32 %v1400_v27, %v1381_v1 }
 0x9e8   : > { %v1877_v32 = vpack.c.bf16 %v1413_v28, %v1413_v28 }
 0x9ea   : > { %1423 = vrot.lane.b32.xlu0 %v1877_v32, %s2734_s27 }
 0xa1a   : > { %v1410_v29 = vpop.permute.xlu1 %1409 }
 0xa1b   : > { %v1415_v30 = vmul.f32 %v1410_v29, %v1383_v26  ;;  %v1405_v34 = vpop.permute.xlu0 %1404 }
 0xa1c   : > { %v1414_v36 = vmul.f32 %v1405_v34, %v1382_v31 }
 0xa1d   : > { %v1879_v35 = vpack.c.bf16 %v1415_v30, %v1415_v30 }
 0xa1e   : > { %v1395_v37 = vpop.permute.xlu1 %1394  ;;  %v1878_v39 = vpack.c.bf16 %v1414_v36, %v1414_v36 }
 0xa1f   : > { %v1412_v38 = vmul.f32 %v1395_v37, %v1380_v33  ;;  %1441 = vrot.lane.b32.xlu0 %v1879_v35, %s2736_s10 }
 0xa20   : > { %1432 = vrot.lane.b32.xlu1 %v1878_v39, %s2735_s19 }
 0xa21   : > { %v1416_v40 = vpack.c.bf16 %v1412_v38, %v1412_v38 }
 0xa23   : > { %1418 = vst.msk [vmem:[#allocation6] sm:$0xf] %vm1417_vm14, %v1416_v40 }
 0xa5c   : > { %v1424_v41 = vpop.permute.xlu0 %1423 }
 0xa5d   : > { %1427 = vst.msk [vmem:[#allocation6] sm:$0xf] %vm1426_vm15, %v1424_v41 }
 0xa91   : > { %v1442_v43 = vpop.permute.xlu0 %1441 }
 0xa92   : > { %v1433_v42 = vpop.permute.xlu1 %1432 }
 0xa93   : > { %1436 = vst.msk [vmem:[#allocation6] sm:$0xf] %vm1435_vm0, %v1433_v42 }
 0xa94   : > { %1445 = vst.msk [vmem:[#allocation6] sm:$0xf] %vm1444_vm1, %v1442_v43 }
 0xa9b   : > { %v1446_v44 = vld [vmem:[#allocation6] sm:$0xf] }
 0xa9c   : > { %1980 = vmatmul.mubr.msk.bf16.vlgmr.msra.gmra.mrb[0].mxu0 %vm1486_vm2, %v1446_v44 }
 0xb6f   : > { %v1524_v46 = vpop.f32.mrb[0].mxu0 }
 0xb70   : > { %v1525_v47 = vadd.f32 %v1854_v45, %v1524_v46  ;;  %v1981_v48 = vpop.f32.mrb[1].mxu0 }
 0xb71   : > { %v1527_v49 = vpop.f32.mrb[2].mxu0 }
 0xb72   : > { %1531 = vst.msk [vmem:[%s3263_s5] sm:$0xff] %vm1530_vm3, %v1525_v47  ;;  %v1982_v50 = vpop.f32.mrb[3].mxu0 }
 0xb73 PF: > { %s3558_s1 = sld [smem:[#allocation40_spill]]  ;;  %s3559_s2 = sld [smem:[#allocation39_spill]] }
 0xb74   : > { %s1548_s28 = sshll.u32 %s3263_s5, 4  ;;  %s3560_s26 = sld [smem:[#allocation53_spill]]  ;;  %s3398_s28 = int_to_ptr.vmem [resolvable:$true] %s1548_s28 }
 0xb75   : > { %s1533_s9 = scalar_lea.sflag [#allocation11], %s3226_s0  ;;  %s2537_s11 = scalar_lea.vmem %s3398_s28, 128 }
 0xb76   : > { %p2538_p8 = scmp.ne.s32.totalorder %s3398_s28, %s2537_s11  ;;  %p3561_p9 = scmp.ne.s32.totalorder %s3526_s13, 0 }
 0xb77   : > { %s2737_s27 = smov [#allocation26]  }
 0xb78   : > { %p2539_p11 = pnand %p2538_p8, %p3561_p9  ;;  %s2541_s19 = sshll.u32 %s2737_s27, 4  ;;  %s2542_s19 = int_to_ptr.vmem [resolvable:$false] %s2541_s19 }
 0xb79   : > { %s1861_s21 = sshll.u32 %s3558_s1, 1  ;;  %s2543_s5 = scalar_lea.vmem %s2542_s19, 256 }
 0xb7a   : > { %s1544_s4 = sadd.s32 %s3559_s2, %s1861_s21  ;;  %p2540_p1 = pneg %p2539_p11 }
 0xb7b   : > { %s1862_s7 = sshll.u32 %s1544_s4, 7  ;;  %p2544_p10 = scmp.lt.s32.totalorder %s3398_s28, %s2542_s19 }
 0xb7c   : > { %s1546_s14 = scalar_lea.hbm %s3560_s26, %s1862_s7  ;;  %p2545_p12 = scmp.lt.s32.totalorder %s2543_s5, %s2537_s11 }
 0xb7e   : > { %p2546_p0 = por %p2545_p12, %p2544_p10 }
 0xb80   : > { %p2547_p6 = pnand %p2546_p0, %p2540_p1 }
 0xb82   : > { %2550 = shalt.err (!%p2547_p6)
}
 0xb83   : > { %s2551_s10 = scalar_lea.hbm %s1546_s14, 128  ;;  %s2555_s2 = scalar_lea.hbm %s3560_s26, 512 }
 0xb84   : > { %p2552_p13 = scmp.ne.s32.totalorder %s1546_s14, %s2551_s10  ;;  %p2556_p4 = scmp.lt.u32.totalorder %s1546_s14, %s3560_s26 }
 0xb85   : > { %p2557_p7 = scmp.lt.u32.totalorder %s2555_s2, %s2551_s10  ;;  %p2559_p8 = scmp.lt.u32.totalorder %s2551_s10, %s1546_s14 }
 0xb86   : > { %p2553_p2 = pnand %p2552_p13, %p3561_p9 }
 0xb87   : > { %p2558_p3 = por %p2557_p7, %p2556_p4 }
 0xb88   : > { %p2554_p5 = pneg %p2553_p2 }
 0xb89   : > { %p2560_p11 = por %p2559_p8, %p2558_p3 }
 0xb8b   : > { %p2561_p1 = pnand %p2560_p11, %p2554_p5 }
 0xb8d   : > { %2564 = shalt.err (!%p2561_p1)
}
 0xb8e   : > { %2019 = dma.vmem_to_hbm [thread:$0]  (%p3561_p9), %s3398_s28, 128, %s1546_s14, %s1533_s9  }
 0xb8f PF: > { %p2074_p10 = scmp.ge.s32.totalorder %s2699_s25, 2  ;;  %s1560_s7 = sand.u32 1, %s2663_s16  }
 0xb90   : > { %p3562_p12 = scmp.ne.s32.totalorder %s3527_s3, 0  ;;  %s1561_s12 = scalar_lea.sflag [#allocation11], %s1560_s7 }
 0xb92   : > { %p2054_p0 = pnand %p2074_p10, %p3562_p12 }
 0xb94   : > { %2646 = dma.done.wait (!%p2054_p0), %s1561_s12, 128  }
 0xb95   : > { %2648 = vsyncadd (!%p2054_p0), %s1561_s12, 4294967168  ;;  %s33_s25 = sadd.s32 1, %s2699_s25   ;;  %s3564_s13 = sld [smem:[#allocation36_spill]] }
 0xb96   : > { %p3425_p6 = scmp.ge.s32.totalorder %s33_s25, 10   ;;  %s3565_s14 = sld [smem:[#allocation37_spill]] }
 0xb97   : > { %s3566_s3 = smov %s3583_s15  ;;  %s3567_s28 = sld [smem:[#allocation42_spill]] }
 0xb98   : > { %s3568_s15 = smov %s3170_s8  ;;  %s3569_s16 = smov %s2667_s17 }
 0xb99   : > { %s3570_s17 = smov %s2671_s18  ;;  %s3571_s18 = smov %s3107_s20 }
 0xb9a   : > { %s3572_s19 = smov %s2687_s22  ;;  %s3573_s20 = smov %s2691_s23 }
 0xb9b   : > { %s3574_s21 = smov %s2695_s24  ;;  %s3575_s22 = smov %s3579_s30 }
 0xb9c   : > { %s3576_s23 = smov %s3566_s3  ;;  %32 = sbr.rel (!%p3425_p6) target bundleno = 28 (0x1c), region = 175 }
 0xb9d   : > { %s3577_s24 = smov %s3567_s28 }
 0xba3   :  { %1566 = vsyncpa [#allocation10], 1 }
 0xba4   :  { %1568 = vsyncpa [#allocation10 + $0x1], 1 }
 0xba5   :  { %1569 = vsyncpa [#allocation13], 1 }
 0xba6   :  { %1571 = vsyncpa [#allocation13 + $0x1], 1 }
 0xba7   :  { %1572 = vsyncpa [#allocation16], 1 }
 0xba8   :  { %1573 = vsyncpa [#allocation19], 1 }
 0xba9   :  { %1574 = vsyncpa [#allocation22], 1 }
 0xbaa   :  { %1575 = vsyncpa [#allocation25], 1 }
 0xbab   :  { %1576 = vsyncpa [#allocation11], 1 }
 0xbac   :  { %1578 = vsyncpa [#allocation11 + $0x1], 1 }

</bundles_post_ra>
